<compile_context>
chip_gen: v7x
topology: tpu7x:2x2x1
jax: 0.10.0
libtpu: 0.0.40
codegen_flags: <defaults>
</compile_context>

<pallas_src>
import math

import jax
import jax.numpy as jnp
from jax import lax
from jax.experimental import pallas as pl
from jax.experimental.pallas import tpu as pltpu

# ---------------- model config (small, shapes consistent with the module) ----------------
B = 2            # batch
S = 16           # sequence length
H = 128          # hidden size (stands in for 768)
NH = 2           # attention heads
DH = H // NH     # head dim
I = 256          # FFN intermediate size
L = 2            # transformer layers
VOCAB = 100
NUM_CLASSES = 6
CLS_PAD = 128    # lane-dense classifier output width (sliced back to 6 outside)
LN_EPS = 1e-5
COMPUTE_DTYPE = jnp.bfloat16   # MXU input dtype; accumulation stays f32


# ---------------------------------- in-kernel helpers ----------------------------------
def _ln(x, g, b):
    """Row-wise LayerNorm over the last (lane) dim.  x:[M,H] f32, g/b:[1,H] f32."""
    mean = jnp.mean(x, axis=-1, keepdims=True)
    var = jnp.mean((x - mean) ** 2, axis=-1, keepdims=True)
    return (x - mean) * lax.rsqrt(var + LN_EPS) * g + b


def _gelu(y):
    # tanh-approximate GELU
    # TODO(synk): HF roberta uses exact erf-GELU; tanh approximation differs slightly.
    return 0.5 * y * (1.0 + jnp.tanh(0.7978845608028654 * (y + 0.044715 * y * y * y)))


def _mm(x_f32, w_ref, b_ref):
    """bf16 MXU matmul with f32 accumulation, + f32 bias."""
    return jnp.dot(x_f32.astype(COMPUTE_DTYPE), w_ref[...],
                   preferred_element_type=jnp.float32) + b_ref[...]


# ---------------------------------- fused forward kernel ----------------------------------
def _rob_kernel(mask_ref, h_in_ref, embg_ref, embb_ref,
                wqkv_ref, bqkv_ref, wo_ref, bo_ref, ln1g_ref, ln1b_ref,
                w1_ref, b1_ref, w2_ref, b2_ref, ln2g_ref, ln2b_ref,
                wpre_ref, bpre_ref, wcls_ref, bcls_ref,
                logits_ref,
                h_state):
    """One grid step == one transformer layer; residual stream lives in h_state (VMEM)."""
    l = pl.program_id(0)
    scale = 1.0 / math.sqrt(DH)

    # ---- embeddings LayerNorm (first grid step only) ----
    @pl.when(l == 0)
    def _():
        h_state[...] = _ln(h_in_ref[...], embg_ref[...], embb_ref[...])

    h = h_state[...]                                   # [B*S, H] f32 residual stream
    mask = mask_ref[...]                               # [B, S] additive mask (0 / -1e9)

    # ---- fused QKV projection: single [H, 3H] matmul ----
    qkv = _mm(h, wqkv_ref, bqkv_ref)                   # [B*S, 3H] f32
    q = qkv[:, 0:H]
    k = qkv[:, H:2 * H]
    v = qkv[:, 2 * H:3 * H]

    # ---- multi-head self-attention: all B*NH tiles in one invocation ----
    ctx_rows = []
    for b in range(B):                                 # static (unrolled) loops, B*NH = 4 tiles
        m_b = mask[b:b + 1, :]                         # [1, S] broadcasts over query rows
        heads = []
        for hh in range(NH):
            r0, r1 = b * S, (b + 1) * S
            c0, c1 = hh * DH, (hh + 1) * DH
            qb = q[r0:r1, c0:c1].astype(COMPUTE_DTYPE)         # [S, DH]
            kb = k[r0:r1, c0:c1].astype(COMPUTE_DTYPE)
            vb = v[r0:r1, c0:c1].astype(COMPUTE_DTYPE)
            s = lax.dot_general(qb, kb, (((1,), (1,)), ((), ())),
                                preferred_element_type=jnp.float32)   # [S, S] = q @ k^T
            s = s * scale + m_b
            s = s - jnp.max(s, axis=-1, keepdims=True)
            p = jnp.exp(s)
            p = p * pl.reciprocal(jnp.sum(p, axis=-1, keepdims=True), approx=True)
            heads.append(jnp.dot(p.astype(COMPUTE_DTYPE), vb,
                                 preferred_element_type=jnp.float32))  # [S, DH]
        ctx_rows.append(jnp.concatenate(heads, axis=-1))               # [S, H]
    ctx = jnp.concatenate(ctx_rows, axis=0)                            # [B*S, H]

    # ---- attention out-proj + residual + LayerNorm (fused) ----
    attn_out = _mm(ctx, wo_ref, bo_ref)
    h = _ln(h + attn_out, ln1g_ref[...], ln1b_ref[...])

    # ---- feed-forward + residual + LayerNorm (fused) ----
    ff = _gelu(_mm(h, w1_ref, b1_ref))
    ff = _mm(ff, w2_ref, b2_ref)
    h = _ln(h + ff, ln2g_ref[...], ln2b_ref[...])

    h_state[...] = h                                   # carry to next layer

    # ---- classification head (last grid step only) ----
    @pl.when(l == L - 1)
    def _():
        # pooler = hidden_state[:, 0]  -> rows 0, S, 2S, ...
        pooled = jnp.concatenate([h[b * S:b * S + 1, :] for b in range(B)], axis=0)  # [B, H]
        pre = jnp.maximum(_mm(pooled, wpre_ref, bpre_ref), 0.0)   # Linear + ReLU
        # dropout(0.1): identity in eval mode (deterministic forward)
        logits_ref[...] = _mm(pre, wcls_ref, bcls_ref).astype(logits_ref.dtype)


# ---------------------------------- wrapper ----------------------------------
def rob_forward(params, input_ids, attention_mask):
    # embedding gather is XLA glue; everything else runs in one pallas_call
    h = params["word_emb"][input_ids] + params["pos_emb"][None, :, :]   # [B, S, H]
    h2d = h.reshape(B * S, H).astype(jnp.float32)
    add_mask = (1.0 - attention_mask.astype(jnp.float32)) * -1e9        # [B, S]

    def full(shape):
        return pl.BlockSpec(shape, lambda l: (0,) * len(shape))

    def per_layer(shape):
        return pl.BlockSpec((pl.Squeezed(),) + shape,
                            lambda l: (l,) + (0,) * len(shape))

    grid_spec = pltpu.PrefetchScalarGridSpec(
        num_scalar_prefetch=0,
        grid=(L,),
        in_specs=[
            full((B, S)),                                  # additive attention mask
            full((B * S, H)),                              # embeddings (pre-LN)
            full((1, H)), full((1, H)),                    # embedding LN gamma / beta
            per_layer((H, 3 * H)), per_layer((1, 3 * H)),  # fused QKV weight / bias
            per_layer((H, H)),     per_layer((1, H)),      # attention out-proj
            per_layer((1, H)),     per_layer((1, H)),      # LN1 gamma / beta
            per_layer((H, I)),     per_layer((1, I)),      # FFN up
            per_layer((I, H)),     per_layer((1, H)),      # FFN down
            per_layer((1, H)),     per_layer((1, H)),      # LN2 gamma / beta
            full((H, H)),          full((1, H)),           # pre_classifier
            full((H, CLS_PAD)),    full((1, CLS_PAD)),     # classifier (lane-padded)
        ],
        out_specs=full((B, CLS_PAD)),
        scratch_shapes=[pltpu.VMEM((B * S, H), jnp.float32)],   # residual stream carry
    )

    logits_pad = pl.pallas_call(
        _rob_kernel,
        out_shape=jax.ShapeDtypeStruct((B, CLS_PAD), jnp.float32),
        grid_spec=grid_spec,
        compiler_params=pltpu.CompilerParams(
            # layer axis carries the residual stream -> must be sequential
            dimension_semantics=("arbitrary",)),
    )(add_mask, h2d,
      params["emb_ln_g"], params["emb_ln_b"],
      params["wqkv"], params["bqkv"], params["wo"], params["bo"],
      params["ln1_g"], params["ln1_b"],
      params["w1"], params["b1"], params["w2"], params["b2"],
      params["ln2_g"], params["ln2_b"],
      params["w_pre"], params["b_pre"], params["w_cls"], params["b_cls"])

    return logits_pad[:, :NUM_CLASSES]                               # [B, 6]


# ---------------------------------- parameter init ----------------------------------
def init_params(key):
    keys = iter(jax.random.split(key, 32))

    def w(shape):
        return (0.02 * jax.random.normal(next(keys), shape, jnp.float32)).astype(COMPUTE_DTYPE)

    p = {}
    p["word_emb"] = 0.02 * jax.random.normal(next(keys), (VOCAB, H), jnp.float32)
    p["pos_emb"] = 0.02 * jax.random.normal(next(keys), (S, H), jnp.float32)
    p["emb_ln_g"] = jnp.ones((1, H), jnp.float32)
    p["emb_ln_b"] = jnp.zeros((1, H), jnp.float32)

    # per-layer weights stacked along a leading L axis; QKV fused into [H, 3H]
    p["wqkv"] = jnp.stack([w((H, 3 * H)) for _ in range(L)])     # bf16
    p["bqkv"] = jnp.zeros((L, 1, 3 * H), jnp.float32)
    p["wo"] = jnp.stack([w((H, H)) for _ in range(L)])
    p["bo"] = jnp.zeros((L, 1, H), jnp.float32)
    p["ln1_g"] = jnp.ones((L, 1, H), jnp.float32)
    p["ln1_b"] = jnp.zeros((L, 1, H), jnp.float32)
    p["w1"] = jnp.stack([w((H, I)) for _ in range(L)])
    p["b1"] = jnp.zeros((L, 1, I), jnp.float32)
    p["w2"] = jnp.stack([w((I, H)) for _ in range(L)])
    p["b2"] = jnp.zeros((L, 1, H), jnp.float32)
    p["ln2_g"] = jnp.ones((L, 1, H), jnp.float32)
    p["ln2_b"] = jnp.zeros((L, 1, H), jnp.float32)

    p["w_pre"] = w((H, H))                                       # pre_classifier Linear(H, H)
    p["b_pre"] = jnp.zeros((1, H), jnp.float32)
    w_cls = 0.02 * jax.random.normal(next(keys), (H, NUM_CLASSES), jnp.float32)
    p["w_cls"] = jnp.zeros((H, CLS_PAD), COMPUTE_DTYPE).at[:, :NUM_CLASSES].set(
        w_cls.astype(COMPUTE_DTYPE))                             # classifier Linear(H, 6), lane-padded
    p["b_cls"] = jnp.zeros((1, CLS_PAD), jnp.float32)
    return p


# ---------------------------------- main ----------------------------------
if __name__ == "__main__":
    key = jax.random.PRNGKey(0)
    k_param, k_ids = jax.random.split(key)

    params = init_params(k_param)
    input_ids = jax.random.randint(k_ids, (B, S), 0, VOCAB, dtype=jnp.int32)
    attention_mask = jnp.ones((B, S), jnp.int32).at[1, S - 3:].set(0)   # padding in batch 1

    logits = jax.jit(rob_forward)(params, input_ids, attention_mask)
    jax.block_until_ready(logits)

    assert logits.shape == (B, NUM_CLASSES)
    assert jnp.all(jnp.isfinite(logits))
    print("KERNEL_OK")
</pallas_src>

<mosaic_0001>
module attributes {stable_mosaic.version = 11 : i64} {
  func.func @_rob_kernel(%arg0: i32, %arg1: memref<2x16xf32, #tpu.memory_space<vmem>>, %arg2: memref<32x128xf32, #tpu.memory_space<vmem>>, %arg3: memref<1x128xf32, #tpu.memory_space<vmem>>, %arg4: memref<1x128xf32, #tpu.memory_space<vmem>>, %arg5: memref<1x128x384xbf16, #tpu.memory_space<vmem>>, %arg6: memref<1x1x384xf32, #tpu.memory_space<vmem>>, %arg7: memref<1x128x128xbf16, #tpu.memory_space<vmem>>, %arg8: memref<1x1x128xf32, #tpu.memory_space<vmem>>, %arg9: memref<1x1x128xf32, #tpu.memory_space<vmem>>, %arg10: memref<1x1x128xf32, #tpu.memory_space<vmem>>, %arg11: memref<1x128x256xbf16, #tpu.memory_space<vmem>>, %arg12: memref<1x1x256xf32, #tpu.memory_space<vmem>>, %arg13: memref<1x256x128xbf16, #tpu.memory_space<vmem>>, %arg14: memref<1x1x128xf32, #tpu.memory_space<vmem>>, %arg15: memref<1x1x128xf32, #tpu.memory_space<vmem>>, %arg16: memref<1x1x128xf32, #tpu.memory_space<vmem>>, %arg17: memref<128x128xbf16, #tpu.memory_space<vmem>>, %arg18: memref<1x128xf32, #tpu.memory_space<vmem>>, %arg19: memref<128x128xbf16, #tpu.memory_space<vmem>>, %arg20: memref<1x128xf32, #tpu.memory_space<vmem>>, %arg21: memref<2x128xf32, #tpu.memory_space<vmem>>, %arg22: memref<32x128xf32, #tpu.memory_space<vmem>>) attributes {dimension_semantics = [#tpu.dimension_semantics<arbitrary>], iteration_bounds = array<i64: 2>, scalar_prefetch = 0 : i64, scratch_operands = 1 : i64, tpu.core_type = #tpu.core_type<tc>, window_params = [{pipeline_mode = #tpu.pipeline_mode<synchronous>, transform_indices = @transform_0, window_bounds = array<i64: 2, 16>}, {pipeline_mode = #tpu.pipeline_mode<synchronous>, transform_indices = @transform_1, window_bounds = array<i64: 32, 128>}, {pipeline_mode = #tpu.pipeline_mode<synchronous>, transform_indices = @transform_2, window_bounds = array<i64: 1, 128>}, {pipeline_mode = #tpu.pipeline_mode<synchronous>, transform_indices = @transform_3, window_bounds = array<i64: 1, 128>}, {transform_indices = @transform_4, window_bounds = array<i64: 1, 128, 384>}, {transform_indices = @transform_5, window_bounds = array<i64: 1, 1, 384>}, {transform_indices = @transform_6, window_bounds = array<i64: 1, 128, 128>}, {transform_indices = @transform_7, window_bounds = array<i64: 1, 1, 128>}, {transform_indices = @transform_8, window_bounds = array<i64: 1, 1, 128>}, {transform_indices = @transform_9, window_bounds = array<i64: 1, 1, 128>}, {transform_indices = @transform_10, window_bounds = array<i64: 1, 128, 256>}, {transform_indices = @transform_11, window_bounds = array<i64: 1, 1, 256>}, {transform_indices = @transform_12, window_bounds = array<i64: 1, 256, 128>}, {transform_indices = @transform_13, window_bounds = array<i64: 1, 1, 128>}, {transform_indices = @transform_14, window_bounds = array<i64: 1, 1, 128>}, {transform_indices = @transform_15, window_bounds = array<i64: 1, 1, 128>}, {pipeline_mode = #tpu.pipeline_mode<synchronous>, transform_indices = @transform_16, window_bounds = array<i64: 128, 128>}, {pipeline_mode = #tpu.pipeline_mode<synchronous>, transform_indices = @transform_17, window_bounds = array<i64: 1, 128>}, {pipeline_mode = #tpu.pipeline_mode<synchronous>, transform_indices = @transform_18, window_bounds = array<i64: 128, 128>}, {pipeline_mode = #tpu.pipeline_mode<synchronous>, transform_indices = @transform_19, window_bounds = array<i64: 1, 128>}, {pipeline_mode = #tpu.pipeline_mode<synchronous>, transform_indices = @transform_20, window_bounds = array<i64: 2, 128>}]} {
    %c0_i32 = arith.constant 0 : i32
    %0 = arith.cmpi eq, %arg0, %c0_i32 : i32
    %1 = arith.extui %0 : i1 to i32
    %c0_i32_0 = arith.constant 0 : i32
    %2 = arith.cmpi ne, %1, %c0_i32_0 : i32
    scf.if %2 {
      %c0_80 = arith.constant 0 : index
      %c0_81 = arith.constant 0 : index
      %208 = vector.load %arg2[%c0_80, %c0_81] : memref<32x128xf32, #tpu.memory_space<vmem>>, vector<32x128xf32>
      %c0_82 = arith.constant 0 : index
      %c0_83 = arith.constant 0 : index
      %209 = vector.load %arg3[%c0_82, %c0_83] : memref<1x128xf32, #tpu.memory_space<vmem>>, vector<1x128xf32>
      %c0_84 = arith.constant 0 : index
      %c0_85 = arith.constant 0 : index
      %210 = vector.load %arg4[%c0_84, %c0_85] : memref<1x128xf32, #tpu.memory_space<vmem>>, vector<1x128xf32>
      %cst_86 = arith.constant dense<0.000000e+00> : vector<32xf32>
      %211 = vector.multi_reduction <add>, %208, %cst_86 [1] : vector<32x128xf32> to vector<32xf32>
      %212 = vector.shape_cast %211 : vector<32xf32> to vector<32x1xf32>
      %cst_87 = arith.constant 1.280000e+02 : f32
      %213 = vector.broadcast %cst_87 : f32 to vector<32x1xf32>
      %214 = arith.divf %212, %213 : vector<32x1xf32>
      %215 = vector.broadcast %214 : vector<32x1xf32> to vector<32x128xf32>
      %216 = arith.subf %208, %215 : vector<32x128xf32>
      %217 = arith.mulf %216, %216 : vector<32x128xf32>
      %cst_88 = arith.constant dense<0.000000e+00> : vector<32xf32>
      %218 = vector.multi_reduction <add>, %217, %cst_88 [1] : vector<32x128xf32> to vector<32xf32>
      %219 = vector.shape_cast %218 : vector<32xf32> to vector<32x1xf32>
      %cst_89 = arith.constant 1.280000e+02 : f32
      %220 = vector.broadcast %cst_89 : f32 to vector<32x1xf32>
      %221 = arith.divf %219, %220 : vector<32x1xf32>
      %222 = vector.broadcast %214 : vector<32x1xf32> to vector<32x128xf32>
      %223 = arith.subf %208, %222 : vector<32x128xf32>
      %cst_90 = arith.constant 9.99999974E-6 : f32
      %224 = vector.broadcast %cst_90 : f32 to vector<32x1xf32>
      %225 = arith.addf %221, %224 : vector<32x1xf32>
      %226 = math.rsqrt %225 : vector<32x1xf32>
      %227 = vector.broadcast %226 : vector<32x1xf32> to vector<32x128xf32>
      %228 = arith.mulf %223, %227 : vector<32x128xf32>
      %229 = vector.broadcast %209 : vector<1x128xf32> to vector<32x128xf32>
      %230 = arith.mulf %228, %229 : vector<32x128xf32>
      %231 = vector.broadcast %210 : vector<1x128xf32> to vector<32x128xf32>
      %232 = arith.addf %230, %231 : vector<32x128xf32>
      %c0_91 = arith.constant 0 : index
      %c0_92 = arith.constant 0 : index
      %233 = vector.load %arg22[%c0_91, %c0_92] : memref<32x128xf32, #tpu.memory_space<vmem>>, vector<32x128xf32>
      tpu.vector_store %arg22[%c0_91, %c0_92], %232 {strides = array<i32>} : memref<32x128xf32, #tpu.memory_space<vmem>>, vector<32x128xf32>,
    } else {
    }
    %c0 = arith.constant 0 : index
    %c0_1 = arith.constant 0 : index
    %3 = vector.load %arg22[%c0, %c0_1] : memref<32x128xf32, #tpu.memory_space<vmem>>, vector<32x128xf32>
    %c0_2 = arith.constant 0 : index
    %c0_3 = arith.constant 0 : index
    %4 = vector.load %arg1[%c0_2, %c0_3] : memref<2x16xf32, #tpu.memory_space<vmem>>, vector<2x16xf32>
    %5 = arith.truncf %3 : vector<32x128xf32> to vector<32x128xbf16>
    %c0_4 = arith.constant 0 : index
    %c0_5 = arith.constant 0 : index
    %c0_6 = arith.constant 0 : index
    %6 = vector.load %arg5[%c0_4, %c0_5, %c0_6] : memref<1x128x384xbf16, #tpu.memory_space<vmem>>, vector<1x128x384xbf16>
    %7 = vector.shape_cast %6 : vector<1x128x384xbf16> to vector<128x384xbf16>
    %cst = arith.constant dense<0.000000e+00> : vector<32x384xf32>
    %8 = tpu.matmul %5, %7, %cst {dimension_numbers = #tpu.dot_dimension_numbers<[1], [0], [0], [1], [0, 0, 1, 1], [], []>} : vector<32x128xbf16>, vector<128x384xbf16>, vector<32x384xf32> -> vector<32x384xf32>
    %c0_7 = arith.constant 0 : index
    %c0_8 = arith.constant 0 : index
    %c0_9 = arith.constant 0 : index
    %9 = vector.load %arg6[%c0_7, %c0_8, %c0_9] : memref<1x1x384xf32, #tpu.memory_space<vmem>>, vector<1x1x384xf32>
    %10 = vector.shape_cast %9 : vector<1x1x384xf32> to vector<1x384xf32>
    %11 = vector.broadcast %10 : vector<1x384xf32> to vector<32x384xf32>
    %12 = arith.addf %8, %11 : vector<32x384xf32>
    %13 = vector.extract_strided_slice %12 {offsets = [0, 0], sizes = [32, 128], strides = [1, 1]} : vector<32x384xf32> to vector<32x128xf32>
    %14 = vector.extract_strided_slice %12 {offsets = [0, 128], sizes = [32, 128], strides = [1, 1]} : vector<32x384xf32> to vector<32x128xf32>
    %15 = vector.extract_strided_slice %12 {offsets = [0, 256], sizes = [32, 128], strides = [1, 1]} : vector<32x384xf32> to vector<32x128xf32>
    %16 = vector.extract_strided_slice %4 {offsets = [0, 0], sizes = [1, 16], strides = [1, 1]} : vector<2x16xf32> to vector<1x16xf32>
    %17 = vector.extract_strided_slice %13 {offsets = [0, 0], sizes = [16, 64], strides = [1, 1]} : vector<32x128xf32> to vector<16x64xf32>
    %18 = arith.truncf %17 : vector<16x64xf32> to vector<16x64xbf16>
    %19 = vector.extract_strided_slice %14 {offsets = [0, 0], sizes = [16, 64], strides = [1, 1]} : vector<32x128xf32> to vector<16x64xf32>
    %20 = arith.truncf %19 : vector<16x64xf32> to vector<16x64xbf16>
    %21 = vector.extract_strided_slice %15 {offsets = [0, 0], sizes = [16, 64], strides = [1, 1]} : vector<32x128xf32> to vector<16x64xf32>
    %22 = arith.truncf %21 : vector<16x64xf32> to vector<16x64xbf16>
    %cst_10 = arith.constant dense<0.000000e+00> : vector<16x16xf32>
    %23 = tpu.matmul %18, %20, %cst_10 {dimension_numbers = #tpu.dot_dimension_numbers<[1], [1], [0], [0], [0, 0, 1, 0], [], []>} : vector<16x64xbf16>, vector<16x64xbf16>, vector<16x16xf32> -> vector<16x16xf32>
    %cst_11 = arith.constant 1.250000e-01 : f32
    %24 = vector.broadcast %cst_11 : f32 to vector<16x16xf32>
    %25 = arith.mulf %23, %24 : vector<16x16xf32>
    %26 = vector.broadcast %16 : vector<1x16xf32> to vector<16x16xf32>
    %27 = arith.addf %25, %26 : vector<16x16xf32>
    %cst_12 = arith.constant dense<0xFF800000> : vector<16xf32>
    %28 = vector.multi_reduction <maximumf>, %27, %cst_12 [1] : vector<16x16xf32> to vector<16xf32>
    %29 = vector.shape_cast %28 : vector<16xf32> to vector<16x1xf32>
    %30 = vector.broadcast %29 : vector<16x1xf32> to vector<16x16xf32>
    %31 = arith.subf %27, %30 : vector<16x16xf32>
    %32 = math.exp %31 : vector<16x16xf32>
    %cst_13 = arith.constant dense<0.000000e+00> : vector<16xf32>
    %33 = vector.multi_reduction <add>, %32, %cst_13 [1] : vector<16x16xf32> to vector<16xf32>
    %34 = vector.shape_cast %33 : vector<16xf32> to vector<16x1xf32>
    %35 = tpu.reciprocal %34 {approx = true} : vector<16x1xf32> -> vector<16x1xf32>
    %36 = vector.broadcast %35 : vector<16x1xf32> to vector<16x16xf32>
    %37 = arith.mulf %32, %36 : vector<16x16xf32>
    %38 = arith.truncf %37 : vector<16x16xf32> to vector<16x16xbf16>
    %cst_14 = arith.constant dense<0.000000e+00> : vector<16x64xf32>
    %39 = tpu.matmul %38, %22, %cst_14 {dimension_numbers = #tpu.dot_dimension_numbers<[1], [0], [0], [1], [0, 0, 1, 1], [], []>} : vector<16x16xbf16>, vector<16x64xbf16>, vector<16x64xf32> -> vector<16x64xf32>
    %40 = vector.extract_strided_slice %13 {offsets = [0, 64], sizes = [16, 64], strides = [1, 1]} : vector<32x128xf32> to vector<16x64xf32>
    %41 = arith.truncf %40 : vector<16x64xf32> to vector<16x64xbf16>
    %42 = vector.extract_strided_slice %14 {offsets = [0, 64], sizes = [16, 64], strides = [1, 1]} : vector<32x128xf32> to vector<16x64xf32>
    %43 = arith.truncf %42 : vector<16x64xf32> to vector<16x64xbf16>
    %44 = vector.extract_strided_slice %15 {offsets = [0, 64], sizes = [16, 64], strides = [1, 1]} : vector<32x128xf32> to vector<16x64xf32>
    %45 = arith.truncf %44 : vector<16x64xf32> to vector<16x64xbf16>
    %cst_15 = arith.constant dense<0.000000e+00> : vector<16x16xf32>
    %46 = tpu.matmul %41, %43, %cst_15 {dimension_numbers = #tpu.dot_dimension_numbers<[1], [1], [0], [0], [0, 0, 1, 0], [], []>} : vector<16x64xbf16>, vector<16x64xbf16>, vector<16x16xf32> -> vector<16x16xf32>
    %cst_16 = arith.constant 1.250000e-01 : f32
    %47 = vector.broadcast %cst_16 : f32 to vector<16x16xf32>
    %48 = arith.mulf %46, %47 : vector<16x16xf32>
    %49 = vector.broadcast %16 : vector<1x16xf32> to vector<16x16xf32>
    %50 = arith.addf %48, %49 : vector<16x16xf32>
    %cst_17 = arith.constant dense<0xFF800000> : vector<16xf32>
    %51 = vector.multi_reduction <maximumf>, %50, %cst_17 [1] : vector<16x16xf32> to vector<16xf32>
    %52 = vector.shape_cast %51 : vector<16xf32> to vector<16x1xf32>
    %53 = vector.broadcast %52 : vector<16x1xf32> to vector<16x16xf32>
    %54 = arith.subf %50, %53 : vector<16x16xf32>
    %55 = math.exp %54 : vector<16x16xf32>
    %cst_18 = arith.constant dense<0.000000e+00> : vector<16xf32>
    %56 = vector.multi_reduction <add>, %55, %cst_18 [1] : vector<16x16xf32> to vector<16xf32>
    %57 = vector.shape_cast %56 : vector<16xf32> to vector<16x1xf32>
    %58 = tpu.reciprocal %57 {approx = true} : vector<16x1xf32> -> vector<16x1xf32>
    %59 = vector.broadcast %58 : vector<16x1xf32> to vector<16x16xf32>
    %60 = arith.mulf %55, %59 : vector<16x16xf32>
    %61 = arith.truncf %60 : vector<16x16xf32> to vector<16x16xbf16>
    %cst_19 = arith.constant dense<0.000000e+00> : vector<16x64xf32>
    %62 = tpu.matmul %61, %45, %cst_19 {dimension_numbers = #tpu.dot_dimension_numbers<[1], [0], [0], [1], [0, 0, 1, 1], [], []>} : vector<16x16xbf16>, vector<16x64xbf16>, vector<16x64xf32> -> vector<16x64xf32>
    %63 = tpu.concatenate %39, %62 in 1 : vector<16x64xf32>, vector<16x64xf32> -> vector<16x128xf32>
    %64 = vector.extract_strided_slice %4 {offsets = [1, 0], sizes = [1, 16], strides = [1, 1]} : vector<2x16xf32> to vector<1x16xf32>
    %65 = vector.extract_strided_slice %13 {offsets = [16, 0], sizes = [16, 64], strides = [1, 1]} : vector<32x128xf32> to vector<16x64xf32>
    %66 = arith.truncf %65 : vector<16x64xf32> to vector<16x64xbf16>
    %67 = vector.extract_strided_slice %14 {offsets = [16, 0], sizes = [16, 64], strides = [1, 1]} : vector<32x128xf32> to vector<16x64xf32>
    %68 = arith.truncf %67 : vector<16x64xf32> to vector<16x64xbf16>
    %69 = vector.extract_strided_slice %15 {offsets = [16, 0], sizes = [16, 64], strides = [1, 1]} : vector<32x128xf32> to vector<16x64xf32>
    %70 = arith.truncf %69 : vector<16x64xf32> to vector<16x64xbf16>
    %cst_20 = arith.constant dense<0.000000e+00> : vector<16x16xf32>
    %71 = tpu.matmul %66, %68, %cst_20 {dimension_numbers = #tpu.dot_dimension_numbers<[1], [1], [0], [0], [0, 0, 1, 0], [], []>} : vector<16x64xbf16>, vector<16x64xbf16>, vector<16x16xf32> -> vector<16x16xf32>
    %cst_21 = arith.constant 1.250000e-01 : f32
    %72 = vector.broadcast %cst_21 : f32 to vector<16x16xf32>
    %73 = arith.mulf %71, %72 : vector<16x16xf32>
    %74 = vector.broadcast %64 : vector<1x16xf32> to vector<16x16xf32>
    %75 = arith.addf %73, %74 : vector<16x16xf32>
    %cst_22 = arith.constant dense<0xFF800000> : vector<16xf32>
    %76 = vector.multi_reduction <maximumf>, %75, %cst_22 [1] : vector<16x16xf32> to vector<16xf32>
    %77 = vector.shape_cast %76 : vector<16xf32> to vector<16x1xf32>
    %78 = vector.broadcast %77 : vector<16x1xf32> to vector<16x16xf32>
    %79 = arith.subf %75, %78 : vector<16x16xf32>
    %80 = math.exp %79 : vector<16x16xf32>
    %cst_23 = arith.constant dense<0.000000e+00> : vector<16xf32>
    %81 = vector.multi_reduction <add>, %80, %cst_23 [1] : vector<16x16xf32> to vector<16xf32>
    %82 = vector.shape_cast %81 : vector<16xf32> to vector<16x1xf32>
    %83 = tpu.reciprocal %82 {approx = true} : vector<16x1xf32> -> vector<16x1xf32>
    %84 = vector.broadcast %83 : vector<16x1xf32> to vector<16x16xf32>
    %85 = arith.mulf %80, %84 : vector<16x16xf32>
    %86 = arith.truncf %85 : vector<16x16xf32> to vector<16x16xbf16>
    %cst_24 = arith.constant dense<0.000000e+00> : vector<16x64xf32>
    %87 = tpu.matmul %86, %70, %cst_24 {dimension_numbers = #tpu.dot_dimension_numbers<[1], [0], [0], [1], [0, 0, 1, 1], [], []>} : vector<16x16xbf16>, vector<16x64xbf16>, vector<16x64xf32> -> vector<16x64xf32>
    %88 = vector.extract_strided_slice %13 {offsets = [16, 64], sizes = [16, 64], strides = [1, 1]} : vector<32x128xf32> to vector<16x64xf32>
    %89 = arith.truncf %88 : vector<16x64xf32> to vector<16x64xbf16>
    %90 = vector.extract_strided_slice %14 {offsets = [16, 64], sizes = [16, 64], strides = [1, 1]} : vector<32x128xf32> to vector<16x64xf32>
    %91 = arith.truncf %90 : vector<16x64xf32> to vector<16x64xbf16>
    %92 = vector.extract_strided_slice %15 {offsets = [16, 64], sizes = [16, 64], strides = [1, 1]} : vector<32x128xf32> to vector<16x64xf32>
    %93 = arith.truncf %92 : vector<16x64xf32> to vector<16x64xbf16>
    %cst_25 = arith.constant dense<0.000000e+00> : vector<16x16xf32>
    %94 = tpu.matmul %89, %91, %cst_25 {dimension_numbers = #tpu.dot_dimension_numbers<[1], [1], [0], [0], [0, 0, 1, 0], [], []>} : vector<16x64xbf16>, vector<16x64xbf16>, vector<16x16xf32> -> vector<16x16xf32>
    %cst_26 = arith.constant 1.250000e-01 : f32
    %95 = vector.broadcast %cst_26 : f32 to vector<16x16xf32>
    %96 = arith.mulf %94, %95 : vector<16x16xf32>
    %97 = vector.broadcast %64 : vector<1x16xf32> to vector<16x16xf32>
    %98 = arith.addf %96, %97 : vector<16x16xf32>
    %cst_27 = arith.constant dense<0xFF800000> : vector<16xf32>
    %99 = vector.multi_reduction <maximumf>, %98, %cst_27 [1] : vector<16x16xf32> to vector<16xf32>
    %100 = vector.shape_cast %99 : vector<16xf32> to vector<16x1xf32>
    %101 = vector.broadcast %100 : vector<16x1xf32> to vector<16x16xf32>
    %102 = arith.subf %98, %101 : vector<16x16xf32>
    %103 = math.exp %102 : vector<16x16xf32>
    %cst_28 = arith.constant dense<0.000000e+00> : vector<16xf32>
    %104 = vector.multi_reduction <add>, %103, %cst_28 [1] : vector<16x16xf32> to vector<16xf32>
    %105 = vector.shape_cast %104 : vector<16xf32> to vector<16x1xf32>
    %106 = tpu.reciprocal %105 {approx = true} : vector<16x1xf32> -> vector<16x1xf32>
    %107 = vector.broadcast %106 : vector<16x1xf32> to vector<16x16xf32>
    %108 = arith.mulf %103, %107 : vector<16x16xf32>
    %109 = arith.truncf %108 : vector<16x16xf32> to vector<16x16xbf16>
    %cst_29 = arith.constant dense<0.000000e+00> : vector<16x64xf32>
    %110 = tpu.matmul %109, %93, %cst_29 {dimension_numbers = #tpu.dot_dimension_numbers<[1], [0], [0], [1], [0, 0, 1, 1], [], []>} : vector<16x16xbf16>, vector<16x64xbf16>, vector<16x64xf32> -> vector<16x64xf32>
    %111 = tpu.concatenate %87, %110 in 1 : vector<16x64xf32>, vector<16x64xf32> -> vector<16x128xf32>
    %112 = tpu.concatenate %63, %111 in 0 : vector<16x128xf32>, vector<16x128xf32> -> vector<32x128xf32>
    %113 = arith.truncf %112 : vector<32x128xf32> to vector<32x128xbf16>
    %c0_30 = arith.constant 0 : index
    %c0_31 = arith.constant 0 : index
    %c0_32 = arith.constant 0 : index
    %114 = vector.load %arg7[%c0_30, %c0_31, %c0_32] : memref<1x128x128xbf16, #tpu.memory_space<vmem>>, vector<1x128x128xbf16>
    %115 = vector.shape_cast %114 : vector<1x128x128xbf16> to vector<128x128xbf16>
    %cst_33 = arith.constant dense<0.000000e+00> : vector<32x128xf32>
    %116 = tpu.matmul %113, %115, %cst_33 {dimension_numbers = #tpu.dot_dimension_numbers<[1], [0], [0], [1], [0, 0, 1, 1], [], []>} : vector<32x128xbf16>, vector<128x128xbf16>, vector<32x128xf32> -> vector<32x128xf32>
    %c0_34 = arith.constant 0 : index
    %c0_35 = arith.constant 0 : index
    %c0_36 = arith.constant 0 : index
    %117 = vector.load %arg8[%c0_34, %c0_35, %c0_36] : memref<1x1x128xf32, #tpu.memory_space<vmem>>, vector<1x1x128xf32>
    %118 = vector.shape_cast %117 : vector<1x1x128xf32> to vector<1x128xf32>
    %119 = vector.broadcast %118 : vector<1x128xf32> to vector<32x128xf32>
    %120 = arith.addf %116, %119 : vector<32x128xf32>
    %121 = arith.addf %3, %120 : vector<32x128xf32>
    %c0_37 = arith.constant 0 : index
    %c0_38 = arith.constant 0 : index
    %c0_39 = arith.constant 0 : index
    %122 = vector.load %arg9[%c0_37, %c0_38, %c0_39] : memref<1x1x128xf32, #tpu.memory_space<vmem>>, vector<1x1x128xf32>
    %123 = vector.shape_cast %122 : vector<1x1x128xf32> to vector<1x128xf32>
    %c0_40 = arith.constant 0 : index
    %c0_41 = arith.constant 0 : index
    %c0_42 = arith.constant 0 : index
    %124 = vector.load %arg10[%c0_40, %c0_41, %c0_42] : memref<1x1x128xf32, #tpu.memory_space<vmem>>, vector<1x1x128xf32>
    %125 = vector.shape_cast %124 : vector<1x1x128xf32> to vector<1x128xf32>
    %cst_43 = arith.constant dense<0.000000e+00> : vector<32xf32>
    %126 = vector.multi_reduction <add>, %121, %cst_43 [1] : vector<32x128xf32> to vector<32xf32>
    %127 = vector.shape_cast %126 : vector<32xf32> to vector<32x1xf32>
    %cst_44 = arith.constant 1.280000e+02 : f32
    %128 = vector.broadcast %cst_44 : f32 to vector<32x1xf32>
    %129 = arith.divf %127, %128 : vector<32x1xf32>
    %130 = vector.broadcast %129 : vector<32x1xf32> to vector<32x128xf32>
    %131 = arith.subf %121, %130 : vector<32x128xf32>
    %132 = arith.mulf %131, %131 : vector<32x128xf32>
    %cst_45 = arith.constant dense<0.000000e+00> : vector<32xf32>
    %133 = vector.multi_reduction <add>, %132, %cst_45 [1] : vector<32x128xf32> to vector<32xf32>
    %134 = vector.shape_cast %133 : vector<32xf32> to vector<32x1xf32>
    %cst_46 = arith.constant 1.280000e+02 : f32
    %135 = vector.broadcast %cst_46 : f32 to vector<32x1xf32>
    %136 = arith.divf %134, %135 : vector<32x1xf32>
    %137 = vector.broadcast %129 : vector<32x1xf32> to vector<32x128xf32>
    %138 = arith.subf %121, %137 : vector<32x128xf32>
    %cst_47 = arith.constant 9.99999974E-6 : f32
    %139 = vector.broadcast %cst_47 : f32 to vector<32x1xf32>
    %140 = arith.addf %136, %139 : vector<32x1xf32>
    %141 = math.rsqrt %140 : vector<32x1xf32>
    %142 = vector.broadcast %141 : vector<32x1xf32> to vector<32x128xf32>
    %143 = arith.mulf %138, %142 : vector<32x128xf32>
    %144 = vector.broadcast %123 : vector<1x128xf32> to vector<32x128xf32>
    %145 = arith.mulf %143, %144 : vector<32x128xf32>
    %146 = vector.broadcast %125 : vector<1x128xf32> to vector<32x128xf32>
    %147 = arith.addf %145, %146 : vector<32x128xf32>
    %148 = arith.truncf %147 : vector<32x128xf32> to vector<32x128xbf16>
    %c0_48 = arith.constant 0 : index
    %c0_49 = arith.constant 0 : index
    %c0_50 = arith.constant 0 : index
    %149 = vector.load %arg11[%c0_48, %c0_49, %c0_50] : memref<1x128x256xbf16, #tpu.memory_space<vmem>>, vector<1x128x256xbf16>
    %150 = vector.shape_cast %149 : vector<1x128x256xbf16> to vector<128x256xbf16>
    %cst_51 = arith.constant dense<0.000000e+00> : vector<32x256xf32>
    %151 = tpu.matmul %148, %150, %cst_51 {dimension_numbers = #tpu.dot_dimension_numbers<[1], [0], [0], [1], [0, 0, 1, 1], [], []>} : vector<32x128xbf16>, vector<128x256xbf16>, vector<32x256xf32> -> vector<32x256xf32>
    %c0_52 = arith.constant 0 : index
    %c0_53 = arith.constant 0 : index
    %c0_54 = arith.constant 0 : index
    %152 = vector.load %arg12[%c0_52, %c0_53, %c0_54] : memref<1x1x256xf32, #tpu.memory_space<vmem>>, vector<1x1x256xf32>
    %153 = vector.shape_cast %152 : vector<1x1x256xf32> to vector<1x256xf32>
    %154 = vector.broadcast %153 : vector<1x256xf32> to vector<32x256xf32>
    %155 = arith.addf %151, %154 : vector<32x256xf32>
    %cst_55 = arith.constant 5.000000e-01 : f32
    %156 = vector.broadcast %cst_55 : f32 to vector<32x256xf32>
    %157 = arith.mulf %156, %155 : vector<32x256xf32>
    %cst_56 = arith.constant 4.471500e-02 : f32
    %158 = vector.broadcast %cst_56 : f32 to vector<32x256xf32>
    %159 = arith.mulf %158, %155 : vector<32x256xf32>
    %160 = arith.mulf %159, %155 : vector<32x256xf32>
    %161 = arith.mulf %160, %155 : vector<32x256xf32>
    %162 = arith.addf %155, %161 : vector<32x256xf32>
    %cst_57 = arith.constant 0.797884583 : f32
    %163 = vector.broadcast %cst_57 : f32 to vector<32x256xf32>
    %164 = arith.mulf %163, %162 : vector<32x256xf32>
    %165 = math.tanh %164 : vector<32x256xf32>
    %cst_58 = arith.constant 1.000000e+00 : f32
    %166 = vector.broadcast %cst_58 : f32 to vector<32x256xf32>
    %167 = arith.addf %166, %165 : vector<32x256xf32>
    %168 = arith.mulf %157, %167 : vector<32x256xf32>
    %169 = arith.truncf %168 : vector<32x256xf32> to vector<32x256xbf16>
    %c0_59 = arith.constant 0 : index
    %c0_60 = arith.constant 0 : index
    %c0_61 = arith.constant 0 : index
    %170 = vector.load %arg13[%c0_59, %c0_60, %c0_61] : memref<1x256x128xbf16, #tpu.memory_space<vmem>>, vector<1x256x128xbf16>
    %171 = vector.shape_cast %170 : vector<1x256x128xbf16> to vector<256x128xbf16>
    %cst_62 = arith.constant dense<0.000000e+00> : vector<32x128xf32>
    %172 = tpu.matmul %169, %171, %cst_62 {dimension_numbers = #tpu.dot_dimension_numbers<[1], [0], [0], [1], [0, 0, 1, 1], [], []>} : vector<32x256xbf16>, vector<256x128xbf16>, vector<32x128xf32> -> vector<32x128xf32>
    %c0_63 = arith.constant 0 : index
    %c0_64 = arith.constant 0 : index
    %c0_65 = arith.constant 0 : index
    %173 = vector.load %arg14[%c0_63, %c0_64, %c0_65] : memref<1x1x128xf32, #tpu.memory_space<vmem>>, vector<1x1x128xf32>
    %174 = vector.shape_cast %173 : vector<1x1x128xf32> to vector<1x128xf32>
    %175 = vector.broadcast %174 : vector<1x128xf32> to vector<32x128xf32>
    %176 = arith.addf %172, %175 : vector<32x128xf32>
    %177 = arith.addf %147, %176 : vector<32x128xf32>
    %c0_66 = arith.constant 0 : index
    %c0_67 = arith.constant 0 : index
    %c0_68 = arith.constant 0 : index
    %178 = vector.load %arg15[%c0_66, %c0_67, %c0_68] : memref<1x1x128xf32, #tpu.memory_space<vmem>>, vector<1x1x128xf32>
    %179 = vector.shape_cast %178 : vector<1x1x128xf32> to vector<1x128xf32>
    %c0_69 = arith.constant 0 : index
    %c0_70 = arith.constant 0 : index
    %c0_71 = arith.constant 0 : index
    %180 = vector.load %arg16[%c0_69, %c0_70, %c0_71] : memref<1x1x128xf32, #tpu.memory_space<vmem>>, vector<1x1x128xf32>
    %181 = vector.shape_cast %180 : vector<1x1x128xf32> to vector<1x128xf32>
    %cst_72 = arith.constant dense<0.000000e+00> : vector<32xf32>
    %182 = vector.multi_reduction <add>, %177, %cst_72 [1] : vector<32x128xf32> to vector<32xf32>
    %183 = vector.shape_cast %182 : vector<32xf32> to vector<32x1xf32>
    %cst_73 = arith.constant 1.280000e+02 : f32
    %184 = vector.broadcast %cst_73 : f32 to vector<32x1xf32>
    %185 = arith.divf %183, %184 : vector<32x1xf32>
    %186 = vector.broadcast %185 : vector<32x1xf32> to vector<32x128xf32>
    %187 = arith.subf %177, %186 : vector<32x128xf32>
    %188 = arith.mulf %187, %187 : vector<32x128xf32>
    %cst_74 = arith.constant dense<0.000000e+00> : vector<32xf32>
    %189 = vector.multi_reduction <add>, %188, %cst_74 [1] : vector<32x128xf32> to vector<32xf32>
    %190 = vector.shape_cast %189 : vector<32xf32> to vector<32x1xf32>
    %cst_75 = arith.constant 1.280000e+02 : f32
    %191 = vector.broadcast %cst_75 : f32 to vector<32x1xf32>
    %192 = arith.divf %190, %191 : vector<32x1xf32>
    %193 = vector.broadcast %185 : vector<32x1xf32> to vector<32x128xf32>
    %194 = arith.subf %177, %193 : vector<32x128xf32>
    %cst_76 = arith.constant 9.99999974E-6 : f32
    %195 = vector.broadcast %cst_76 : f32 to vector<32x1xf32>
    %196 = arith.addf %192, %195 : vector<32x1xf32>
    %197 = math.rsqrt %196 : vector<32x1xf32>
    %198 = vector.broadcast %197 : vector<32x1xf32> to vector<32x128xf32>
    %199 = arith.mulf %194, %198 : vector<32x128xf32>
    %200 = vector.broadcast %179 : vector<1x128xf32> to vector<32x128xf32>
    %201 = arith.mulf %199, %200 : vector<32x128xf32>
    %202 = vector.broadcast %181 : vector<1x128xf32> to vector<32x128xf32>
    %203 = arith.addf %201, %202 : vector<32x128xf32>
    %c0_77 = arith.constant 0 : index
    %c0_78 = arith.constant 0 : index
    %204 = vector.load %arg22[%c0_77, %c0_78] : memref<32x128xf32, #tpu.memory_space<vmem>>, vector<32x128xf32>
    tpu.vector_store %arg22[%c0_77, %c0_78], %203 {strides = array<i32>} : memref<32x128xf32, #tpu.memory_space<vmem>>, vector<32x128xf32>,
    %c1_i32 = arith.constant 1 : i32
    %205 = arith.cmpi eq, %arg0, %c1_i32 : i32
    %206 = arith.extui %205 : i1 to i32
    %c0_i32_79 = arith.constant 0 : i32
    %207 = arith.cmpi ne, %206, %c0_i32_79 : i32
    scf.if %207 {
      %208 = vector.extract_strided_slice %203 {offsets = [0, 0], sizes = [1, 128], strides = [1, 1]} : vector<32x128xf32> to vector<1x128xf32>
      %209 = vector.extract_strided_slice %203 {offsets = [16, 0], sizes = [1, 128], strides = [1, 1]} : vector<32x128xf32> to vector<1x128xf32>
      %210 = tpu.concatenate %208, %209 in 0 : vector<1x128xf32>, vector<1x128xf32> -> vector<2x128xf32>
      %211 = arith.truncf %210 : vector<2x128xf32> to vector<2x128xbf16>
      %c0_80 = arith.constant 0 : index
      %c0_81 = arith.constant 0 : index
      %212 = vector.load %arg17[%c0_80, %c0_81] : memref<128x128xbf16, #tpu.memory_space<vmem>>, vector<128x128xbf16>
      %cst_82 = arith.constant dense<0.000000e+00> : vector<2x128xf32>
      %213 = tpu.matmul %211, %212, %cst_82 {dimension_numbers = #tpu.dot_dimension_numbers<[1], [0], [0], [1], [0, 0, 1, 1], [], []>} : vector<2x128xbf16>, vector<128x128xbf16>, vector<2x128xf32> -> vector<2x128xf32>
      %c0_83 = arith.constant 0 : index
      %c0_84 = arith.constant 0 : index
      %214 = vector.load %arg18[%c0_83, %c0_84] : memref<1x128xf32, #tpu.memory_space<vmem>>, vector<1x128xf32>
      %215 = vector.broadcast %214 : vector<1x128xf32> to vector<2x128xf32>
      %216 = arith.addf %213, %215 : vector<2x128xf32>
      %cst_85 = arith.constant 0.000000e+00 : f32
      %217 = vector.broadcast %cst_85 : f32 to vector<2x128xf32>
      %218 = arith.maximumf %216, %217 : vector<2x128xf32>
      %219 = arith.truncf %218 : vector<2x128xf32> to vector<2x128xbf16>
      %c0_86 = arith.constant 0 : index
      %c0_87 = arith.constant 0 : index
      %220 = vector.load %arg19[%c0_86, %c0_87] : memref<128x128xbf16, #tpu.memory_space<vmem>>, vector<128x128xbf16>
      %cst_88 = arith.constant dense<0.000000e+00> : vector<2x128xf32>
      %221 = tpu.matmul %219, %220, %cst_88 {dimension_numbers = #tpu.dot_dimension_numbers<[1], [0], [0], [1], [0, 0, 1, 1], [], []>} : vector<2x128xbf16>, vector<128x128xbf16>, vector<2x128xf32> -> vector<2x128xf32>
      %c0_89 = arith.constant 0 : index
      %c0_90 = arith.constant 0 : index
      %222 = vector.load %arg20[%c0_89, %c0_90] : memref<1x128xf32, #tpu.memory_space<vmem>>, vector<1x128xf32>
      %223 = vector.broadcast %222 : vector<1x128xf32> to vector<2x128xf32>
      %224 = arith.addf %221, %223 : vector<2x128xf32>
      %c0_91 = arith.constant 0 : index
      %c0_92 = arith.constant 0 : index
      %225 = vector.load %arg21[%c0_91, %c0_92] : memref<2x128xf32, #tpu.memory_space<vmem>>, vector<2x128xf32>
      tpu.vector_store %arg21[%c0_91, %c0_92], %224 {strides = array<i32>} : memref<2x128xf32, #tpu.memory_space<vmem>>, vector<2x128xf32>,
    } else {
    }
    return
  }
  func.func @transform_0(%arg0: i32) -> (i32, i32) {
    %c0_i32 = arith.constant 0 : i32
    %c0_i32_0 = arith.constant 0 : i32
    %c0_i32_1 = arith.constant 0 : i32
    return %c0_i32, %c0_i32_0 : i32, i32
  }
  func.func @transform_1(%arg0: i32) -> (i32, i32) {
    %c0_i32 = arith.constant 0 : i32
    %c0_i32_0 = arith.constant 0 : i32
    %c0_i32_1 = arith.constant 0 : i32
    return %c0_i32, %c0_i32_0 : i32, i32
  }
  func.func @transform_2(%arg0: i32) -> (i32, i32) {
    %c0_i32 = arith.constant 0 : i32
    %c0_i32_0 = arith.constant 0 : i32
    %c0_i32_1 = arith.constant 0 : i32
    return %c0_i32, %c0_i32_0 : i32, i32
  }
  func.func @transform_3(%arg0: i32) -> (i32, i32) {
    %c0_i32 = arith.constant 0 : i32
    %c0_i32_0 = arith.constant 0 : i32
    %c0_i32_1 = arith.constant 0 : i32
    return %c0_i32, %c0_i32_0 : i32, i32
  }
  func.func @transform_4(%arg0: i32) -> (i32, i32, i32) {
    %c0_i32 = arith.constant 0 : i32
    %c0_i32_0 = arith.constant 0 : i32
    %c0_i32_1 = arith.constant 0 : i32
    return %arg0, %c0_i32, %c0_i32_0 : i32, i32, i32
  }
  func.func @transform_5(%arg0: i32) -> (i32, i32, i32) {
    %c0_i32 = arith.constant 0 : i32
    %c0_i32_0 = arith.constant 0 : i32
    %c0_i32_1 = arith.constant 0 : i32
    return %arg0, %c0_i32, %c0_i32_0 : i32, i32, i32
  }
  func.func @transform_6(%arg0: i32) -> (i32, i32, i32) {
    %c0_i32 = arith.constant 0 : i32
    %c0_i32_0 = arith.constant 0 : i32
    %c0_i32_1 = arith.constant 0 : i32
    return %arg0, %c0_i32, %c0_i32_0 : i32, i32, i32
  }
  func.func @transform_7(%arg0: i32) -> (i32, i32, i32) {
    %c0_i32 = arith.constant 0 : i32
    %c0_i32_0 = arith.constant 0 : i32
    %c0_i32_1 = arith.constant 0 : i32
    return %arg0, %c0_i32, %c0_i32_0 : i32, i32, i32
  }
  func.func @transform_8(%arg0: i32) -> (i32, i32, i32) {
    %c0_i32 = arith.constant 0 : i32
    %c0_i32_0 = arith.constant 0 : i32
    %c0_i32_1 = arith.constant 0 : i32
    return %arg0, %c0_i32, %c0_i32_0 : i32, i32, i32
  }
  func.func @transform_9(%arg0: i32) -> (i32, i32, i32) {
    %c0_i32 = arith.constant 0 : i32
    %c0_i32_0 = arith.constant 0 : i32
    %c0_i32_1 = arith.constant 0 : i32
    return %arg0, %c0_i32, %c0_i32_0 : i32, i32, i32
  }
  func.func @transform_10(%arg0: i32) -> (i32, i32, i32) {
    %c0_i32 = arith.constant 0 : i32
    %c0_i32_0 = arith.constant 0 : i32
    %c0_i32_1 = arith.constant 0 : i32
    return %arg0, %c0_i32, %c0_i32_0 : i32, i32, i32
  }
  func.func @transform_11(%arg0: i32) -> (i32, i32, i32) {
    %c0_i32 = arith.constant 0 : i32
    %c0_i32_0 = arith.constant 0 : i32
    %c0_i32_1 = arith.constant 0 : i32
    return %arg0, %c0_i32, %c0_i32_0 : i32, i32, i32
  }
  func.func @transform_12(%arg0: i32) -> (i32, i32, i32) {
    %c0_i32 = arith.constant 0 : i32
    %c0_i32_0 = arith.constant 0 : i32
    %c0_i32_1 = arith.constant 0 : i32
    return %arg0, %c0_i32, %c0_i32_0 : i32, i32, i32
  }
  func.func @transform_13(%arg0: i32) -> (i32, i32, i32) {
    %c0_i32 = arith.constant 0 : i32
    %c0_i32_0 = arith.constant 0 : i32
    %c0_i32_1 = arith.constant 0 : i32
    return %arg0, %c0_i32, %c0_i32_0 : i32, i32, i32
  }
  func.func @transform_14(%arg0: i32) -> (i32, i32, i32) {
    %c0_i32 = arith.constant 0 : i32
    %c0_i32_0 = arith.constant 0 : i32
    %c0_i32_1 = arith.constant 0 : i32
    return %arg0, %c0_i32, %c0_i32_0 : i32, i32, i32
  }
  func.func @transform_15(%arg0: i32) -> (i32, i32, i32) {
    %c0_i32 = arith.constant 0 : i32
    %c0_i32_0 = arith.constant 0 : i32
    %c0_i32_1 = arith.constant 0 : i32
    return %arg0, %c0_i32, %c0_i32_0 : i32, i32, i32
  }
  func.func @transform_16(%arg0: i32) -> (i32, i32) {
    %c0_i32 = arith.constant 0 : i32
    %c0_i32_0 = arith.constant 0 : i32
    %c0_i32_1 = arith.constant 0 : i32
    return %c0_i32, %c0_i32_0 : i32, i32
  }
  func.func @transform_17(%arg0: i32) -> (i32, i32) {
    %c0_i32 = arith.constant 0 : i32
    %c0_i32_0 = arith.constant 0 : i32
    %c0_i32_1 = arith.constant 0 : i32
    return %c0_i32, %c0_i32_0 : i32, i32
  }
  func.func @transform_18(%arg0: i32) -> (i32, i32) {
    %c0_i32 = arith.constant 0 : i32
    %c0_i32_0 = arith.constant 0 : i32
    %c0_i32_1 = arith.constant 0 : i32
    return %c0_i32, %c0_i32_0 : i32, i32
  }
  func.func @transform_19(%arg0: i32) -> (i32, i32) {
    %c0_i32 = arith.constant 0 : i32
    %c0_i32_0 = arith.constant 0 : i32
    %c0_i32_1 = arith.constant 0 : i32
    return %c0_i32, %c0_i32_0 : i32, i32
  }
  func.func @transform_20(%arg0: i32) -> (i32, i32) {
    %c0_i32 = arith.constant 0 : i32
    %c0_i32_0 = arith.constant 0 : i32
    %c0_i32_1 = arith.constant 0 : i32
    return %c0_i32, %c0_i32_0 : i32, i32
  }
}

</mosaic_0001>

<bundles_post_ra>
// kernel: rob_forward.1
= control target key start
LH: loop header
LB: loop body
LE: loop exit
PB: predicated region body
PF: predicated region fallthrough
CT: control target
= control target key end

     0   :  { %s4590_s0 = inlined_call_operand.vmem [shape: f32[2,16], index: 0, kind: input, shape index: {}]   ;;  %s4591_s1 = inlined_call_operand.vmem [shape: f32[32,128], index: 1, kind: input, shape index: {}]   ;;  %s4592_s2 = inlined_call_operand.vmem [shape: f32[1,128], index: 2, kind: input, shape index: {}]   ;;  %s4593_s3 = inlined_call_operand.vmem [shape: f32[1,128], index: 3, kind: input, shape index: {}]   ;;  %s4594_s4 = inlined_call_operand.vmem [shape: bf16[2,128,384], index: 4, kind: input, shape index: {}]   ;;  %s4595_s5 = inlined_call_operand.vmem [shape: f32[2,1,384], index: 5, kind: input, shape index: {}]   ;;  %s4596_s6 = inlined_call_operand.hbm [shape: bf16[2,128,128], index: 6, kind: input, shape index: {}]   ;;  %s4597_s7 = inlined_call_operand.vmem [shape: f32[2,1,128], index: 7, kind: input, shape index: {}]   ;;  %s4598_s8 = inlined_call_operand.vmem [shape: f32[2,1,128], index: 8, kind: input, shape index: {}]   ;;  %s4599_s9 = inlined_call_operand.vmem [shape: f32[2,1,128], index: 9, kind: input, shape index: {}]   ;;  %s4600_s10 = inlined_call_operand.hbm [shape: bf16[2,128,256], index: 10, kind: input, shape index: {}]   ;;  %s4601_s11 = inlined_call_operand.vmem [shape: f32[2,1,256], index: 11, kind: input, shape index: {}]   ;;  %s4602_s12 = inlined_call_operand.hbm [shape: bf16[2,256,128], index: 12, kind: input, shape index: {}]   ;;  %s4603_s13 = inlined_call_operand.vmem [shape: f32[2,1,128], index: 13, kind: input, shape index: {}]   ;;  %s4604_s14 = inlined_call_operand.vmem [shape: f32[2,1,128], index: 14, kind: input, shape index: {}]   ;;  %s4605_s15 = inlined_call_operand.hbm [shape: f32[2,1,128], index: 15, kind: input, shape index: {}]   ;;  %s4606_s16 = inlined_call_operand.hbm [shape: bf16[128,128], index: 16, kind: input, shape index: {}]   ;;  %s4607_s17 = inlined_call_operand.vmem [shape: f32[1,128], index: 17, kind: input, shape index: {}]   ;;  %s4608_s18 = inlined_call_operand.hbm [shape: bf16[128,128], index: 18, kind: input, shape index: {}]   ;;  %s4609_s19 = inlined_call_operand.vmem [shape: f32[1,128], index: 19, kind: input, shape index: {}]   ;;  %s4610_s20 = inlined_call_operand.hbm [shape: f32[2,128], index: 20, kind: output, shape index: {}]  }
   0x1   :  { %4631 = sst [smem:[#allocation24_spill]] %s4590_s0 }
   0x2   :  { %4632 = sst [smem:[#allocation25_spill]] %s4591_s1 }
   0x3   :  { %4633 = sst [smem:[#allocation26_spill]] %s4592_s2 }
   0x4   :  { %4634 = sst [smem:[#allocation27_spill]] %s4593_s3 }
   0x5   :  { %4635 = sst [smem:[#allocation28_spill]] %s4594_s4 }
   0x6   :  { %4636 = sst [smem:[#allocation29_spill]] %s4595_s5 }
   0x7   :  { %4637 = sst [smem:[#allocation30_spill]] %s4596_s6 }
   0x8   :  { %4638 = sst [smem:[#allocation31_spill]] %s4597_s7 }
   0x9   :  { %4639 = sst [smem:[#allocation32_spill]] %s4598_s8 }
   0xa   :  { %4640 = sst [smem:[#allocation33_spill]] %s4599_s9 }
   0xb   :  { %4641 = sst [smem:[#allocation34_spill]] %s4600_s10 }
   0xc   :  { %4642 = sst [smem:[#allocation35_spill]] %s4601_s11 }
   0xd   :  { %4643 = sst [smem:[#allocation36_spill]] %s4602_s12 }
   0xe   :  { %4644 = sst [smem:[#allocation37_spill]] %s4603_s13 }
   0xf   :  { %4645 = sst [smem:[#allocation38_spill]] %s4604_s14 }
  0x10   :  { %4646 = sst [smem:[#allocation39_spill]] %s4606_s16 }
  0x11   :  { %4647 = sst [smem:[#allocation40_spill]] %s4607_s17 }
  0x12   :  { %4648 = sst [smem:[#allocation41_spill]] %s4609_s19 }
  0x13   :  { %4649 = sst [smem:[#allocation42_spill]] %s4610_s20 }
  0x14   :  { %25 = vsyncpa [#allocation4], 0 }
  0x15   :  { %27 = vsyncpa [#allocation4 + $0x1], 0 }
  0x16   :  { %28 = vsyncpa [#allocation7], 0 }
  0x17   :  { %30 = vsyncpa [#allocation7 + $0x1], 0 }
  0x18   :  { %31 = vsyncpa [#allocation10], 0 }
  0x19   :  { %33 = vsyncpa [#allocation10 + $0x1], 0 }
  0x1a   :  { %34 = vsyncpa [#allocation13], 0 }
  0x1b   :  { %35 = vsyncpa [#allocation5], 0  ;;  %s3931_s1 = smov 0   ;;  %s3933_s22 = smov 0  }
  0x1c   :  { %s3935_s23 = smov 0   ;;  %s3937_s24 = smov 0  }
  0x1d LB: > { %4650 = sst [smem:[#allocation21_spill]] %s3803_s23  ;;  %s3950_s2 = sadd.s32 4294967295, %s3807_s24   ;;  %s3807_s24 = sphi %s3937_s24, %s4705_s24   ;;  %s3803_s23 = sphi %s3935_s23, %s4707_s23   ;;  %s3799_s22 = sphi %s3933_s22, %s4709_s22   ;;  %s3795_s1 = sphi %s3931_s1, %s4708_s1  }
  0x1e   : > { %s3953_s25 = sadd.s32 1, %s3807_s24   ;;  %s184_s26 = sadd.s32 1, %s3803_s23 }
  0x1f   : > { %4651 = sst [smem:[#allocation22_spill]] %s3953_s25  ;;  %s181_s3 = ssub.s32 %s3807_s24, %s3953_s25 }
  0x20   : > { %p182_p0 = scmp.eq.s32.totalorder %s181_s3, 0  ;;  %p191_p1 = scmp.ne.s32.totalorder %s3803_s23, %s3799_s22 }
  0x21   : > { %p192_p2 = scmp.eq.s32.totalorder %s3807_s24, 0  ;;  %p197_p3 = scmp.ne.s32.totalorder %s3799_s22, %s3795_s1 }
  0x22   : > { %s3963_s27 = scalar_select %p182_p0, %s3803_s23, %s184_s26  }
  0x23   : > { %p3965_p4 = por %p192_p2, %p191_p1  ;;  %p4616_p5 = scmp.eq.s32.totalorder %s3950_s2, 0 }
  0x24   : > { %4652 = sst [smem:[#allocation23_spill]] %s3963_s27  ;;  %p2940_p6 = scmp.ge.s32.totalorder %s3807_s24, 1 }
  0x25   : > { %p547_p7 = scmp.lt.s32.totalorder %s3807_s24, 3  ;;  %p3974_p8 = por %p4616_p5, %p197_p3 }
  0x26   : > { %s3809_s30 = smov [#allocation11]   ;;  %p3323_p13 = scmp.lt.s32.totalorder %s3807_s24, 2 }
  0x27   : > { %s4654_s4 = scalar_select %p3974_p8, 1, 0 }
  0x28   : > { %p3979_p10 = pnand %p2940_p6, %p547_p7  ;;  %s571_s0 = sshll.u32 %s3809_s30, 4  ;;  %s572_s0 = int_to_ptr.vmem [resolvable:$true] %s571_s0 }
  0x29   : > { %s3993_s1 = sand.u32 1, %s3803_s23   ;;  %p3998_p0 = pnand %p3323_p13, %p3965_p4 }
  0x2a   : > { %s4655_s29 = scalar_select %p3979_p10, 1, 0 }
  0x2b   : > { %p3301_p11 = pneg %p3979_p10  ;;  %s4658_s16 = sld [smem:[#allocation39_spill]] }
  0x2c   : > { %s4657_s26 = scalar_select %p3998_p0, 1, 0 }
  0x2d   : > { %p3987_p12 = pnand %p3301_p11, %p4616_p5 }
  0x2f   : > { %s4656_s21 = scalar_select %p3987_p12, 1, 0 }
  0x30   : > { %p4624_p2 = pneg %p3987_p12 }
  0x31   : > { %s3551_s25 = scalar_lea.hbm %s4658_s16, 1024 }
  0x32   : > { %p3552_p1 = scmp.ne.s32.totalorder %s4658_s16, %s3551_s25  ;;  %p3558_p4 = scmp.lt.u32.totalorder %s3551_s25, %s4658_s16 }
  0x34   : > { %p3554_p3 = pnand %p4624_p2, %p3552_p1 }
  0x36   : > { %p3555_p6 = pneg %p3554_p3 }
  0x38   : > { %p3560_p7 = pnand %p3558_p4, %p3555_p6 }
  0x3a   : > { %3563 = shalt.err (!%p3560_p7)
}
  0x3b   : > { %s3564_s23 = scalar_lea.vmem %s572_s0, 1024  ;;  %p3572_p5 = scmp.lt.s32.totalorder %s572_s0, %s572_s0 }
  0x3c   : > { %p3565_p11 = scmp.ne.s32.totalorder %s572_s0, %s3564_s23  ;;  %p3573_p8 = scmp.lt.s32.totalorder %s3564_s23, %s3564_s23 }
  0x3e   : > { %p3567_p13 = pnand %p3565_p11, %p4624_p2  ;;  %p3574_p10 = por %p3573_p8, %p3572_p5 }
  0x40   : > { %p3568_p9 = pneg %p3567_p13 }
  0x42   : > { %p3575_p0 = pnand %p3574_p10, %p3568_p9 }
  0x44   : > { %3578 = shalt.err (!%p3575_p0)
}
  0x45   : > { %s4620_s19 = smov 64   ;;  %s4622_s20 = smov 4  }
  0x46   : > { %3304 = dma.hbm_to_vmem [thread:$0]  (!%p3987_p12), %s4658_s16, 1024, %s572_s0, [#allocation10], %s4620_s19, %s4620_s19, %s4622_s20  }
  0x47   : > { %s2947_s23 = sshll.u32 %s3993_s1, 7  ;;  %s3067_s3 = sshll.u32 %s3807_s24, 11 }
  0x48   : > { %s4659_s10 = sld [smem:[#allocation34_spill]]  ;;  %s662_s14 = scalar_lea.vmem [#allocation6], %s2947_s23 }
  0x49   : > { %s669_s13 = sshll.u32 %s662_s14, 4  ;;  %s4660_s11 = sand.u32 1, %s3807_s24   ;;  %s4038_s13 = int_to_ptr.vmem [resolvable:$true] %s669_s13 }
  0x4a   : > { %s4042_s25 = scalar_lea.sflag [#allocation7], %s4660_s11  ;;  %p4661_p8 = scmp.ne.s32.totalorder %s4657_s26, 0 }
  0x4c   : > { %p4048_p9 = pneg %p4661_p8 }
  0x4e   : > { %s4034_s17 = scalar_lea.hbm %s4659_s10, %s3067_s3  ;;  %s3584_s14 = scalar_lea.hbm %s4659_s10, 4096 }
  0x4f   : > { %s3579_s0 = scalar_lea.hbm %s4034_s17, 2048  ;;  %p3585_p1 = scmp.lt.u32.totalorder %s4034_s17, %s4659_s10 }
  0x50   : > { %p3580_p5 = scmp.ne.s32.totalorder %s4034_s17, %s3579_s0  ;;  %p3586_p3 = scmp.lt.u32.totalorder %s3584_s14, %s3579_s0 }
  0x51   : > { %s4662_s27 = scalar_select %p4048_p9, 1, 0 }
  0x52   : > { %p3582_p10 = pnand %p4048_p9, %p3580_p5  ;;  %p3587_p6 = por %p3586_p3, %p3585_p1 }
  0x53   : > { %p3588_p4 = scmp.lt.u32.totalorder %s3579_s0, %s4034_s17 }
  0x54   : > { %p3583_p0 = pneg %p3582_p10 }
  0x55   : > { %p3589_p7 = por %p3588_p4, %p3587_p6 }
  0x57   : > { %p3590_p11 = pnand %p3589_p7, %p3583_p0 }
  0x59   : > { %3593 = shalt.err (!%p3590_p11)
}
  0x5a   : > { %s3594_s11 = scalar_lea.vmem %s4038_s13, 2048  ;;  %s3812_s30 = smov [#allocation6]  }
  0x5b   : > { %p3595_p13 = scmp.ne.s32.totalorder %s4038_s13, %s3594_s11  ;;  %s3599_s28 = sshll.u32 %s3812_s30, 4  ;;  %s3600_s28 = int_to_ptr.vmem [resolvable:$false] %s3599_s28 }
  0x5c   : > { %s3601_s19 = scalar_lea.vmem %s3600_s28, 4096  ;;  %p3602_p2 = scmp.lt.s32.totalorder %s4038_s13, %s3600_s28 }
  0x5d   : > { %p3597_p5 = pnand %p3595_p13, %p4048_p9  ;;  %p3603_p12 = scmp.lt.s32.totalorder %s3601_s19, %s3594_s11 }
  0x5f   : > { %p3598_p10 = pneg %p3597_p5  ;;  %p3604_p1 = por %p3603_p12, %p3602_p2 }
  0x61   : > { %p3605_p3 = pnand %p3604_p1, %p3598_p10 }
  0x63   : > { %3608 = shalt.err (!%p3605_p3)
}
  0x64   : > { %s3813_s20 = smov 128   ;;  %s3814_s0 = smov 8  }
  0x65   : > { %3314 = dma.hbm_to_vmem [thread:$0]  (!%p4661_p8), %s4034_s17, 2048, %s4038_s13, %s4042_s25, %s3813_s20, %s3813_s20, %s3814_s0  }
  0x66   : > { %s4663_s12 = sld [smem:[#allocation36_spill]]  ;;  %s690_s11 = scalar_lea.vmem [#allocation8], %s2947_s23 }
  0x67   : > { %s697_s19 = sshll.u32 %s690_s11, 4  ;;  %s3815_s10 = smov [#allocation12]   ;;  %s4081_s19 = int_to_ptr.vmem [resolvable:$true] %s697_s19 }
  0x68   : > { %s587_s16 = sshll.u32 %s3815_s10, 4  ;;  %s3609_s8 = scalar_lea.hbm %s4608_s18, 1024  ;;  %s588_s16 = int_to_ptr.vmem [resolvable:$true] %s587_s16 }
  0x69   : > { %p3610_p12 = scmp.ne.s32.totalorder %s4608_s18, %s3609_s8  ;;  %p4664_p2 = scmp.ne.s32.totalorder %s4656_s21, 0 }
  0x6a   : > { %p3616_p7 = scmp.lt.u32.totalorder %s3609_s8, %s4608_s18 }
  0x6b   : > { %p4665_p0 = pneg %p4664_p2 }
  0x6c   : > { %s4077_s28 = scalar_lea.hbm %s4663_s12, %s3067_s3 }
  0x6d   : > { %p3612_p6 = pnand %p3610_p12, %p4665_p0 }
  0x6f   : > { %p3613_p4 = pneg %p3612_p6 }
  0x71   : > { %p3618_p11 = pnand %p3616_p7, %p3613_p4 }
  0x73   : > { %3621 = shalt.err (!%p3618_p11)
}
  0x74   : > { %s3622_s10 = scalar_lea.vmem %s588_s16, 1024  ;;  %p4666_p5 = pmov %p4665_p0 }
  0x75   : > { %p3623_p13 = scmp.ne.s32.totalorder %s588_s16, %s3622_s10  ;;  %p3630_p3 = scmp.lt.s32.totalorder %s588_s16, %s588_s16 }
  0x76   : > { %p3631_p8 = scmp.lt.s32.totalorder %s3622_s10, %s3622_s10 }
  0x77   : > { %p3625_p10 = pnand %p3623_p13, %p4666_p5 }
  0x78   : > { %p3632_p9 = por %p3631_p8, %p3630_p3 }
  0x79   : > { %p3626_p1 = pneg %p3625_p10 }
  0x7b   : > { %p3633_p0 = pnand %p3632_p9, %p3626_p1 }
  0x7d   : > { %3636 = shalt.err (!%p3633_p0)
}
  0x7e   : > { %s4667_s5 = smov 4   ;;  %s4668_s7 = smov 64  }
  0x7f   : > { %3307 = dma.hbm_to_vmem [thread:$0]  (!%p4664_p2), %s4608_s18, 1024, %s588_s16, [#allocation13], %s4668_s7, %s4668_s7, %s4667_s5  }
  0x80   : > { %s2944_s3 = sshll.u32 %s3993_s1, 6  ;;  %s3066_s20 = sshll.u32 %s3807_s24, 10 }
  0x81   : > { %s4669_s6 = sld [smem:[#allocation30_spill]]  ;;  %s623_s21 = scalar_lea.vmem [#allocation3], %s2944_s3 }
  0x82   : > { %s630_s11 = sshll.u32 %s623_s21, 4  ;;  %s620_s13 = scalar_lea.sflag [#allocation4], %s3993_s1  ;;  %s4113_s11 = int_to_ptr.vmem [resolvable:$true] %s630_s11 }
  0x83   : > { %p4670_p9 = scmp.ne.s32.totalorder %s4662_s27, 0 }
  0x87   : > { %s4111_s30 = scalar_lea.hbm %s4669_s6, %s3066_s20  ;;  %s3642_s10 = scalar_lea.hbm %s4669_s6, 2048 }
  0x88   : > { %s3637_s17 = scalar_lea.hbm %s4111_s30, 1024  ;;  %p3643_p6 = scmp.lt.u32.totalorder %s4111_s30, %s4669_s6 }
  0x89   : > { %p3638_p8 = scmp.ne.s32.totalorder %s4111_s30, %s3637_s17  ;;  %p3644_p4 = scmp.lt.u32.totalorder %s3642_s10, %s3637_s17 }
  0x8a   : > { %p3646_p11 = scmp.lt.u32.totalorder %s3637_s17, %s4111_s30 }
  0x8b   : > { %p3640_p12 = pnand %p3638_p8, %p4670_p9  ;;  %p3645_p7 = por %p3644_p4, %p3643_p6 }
  0x8d   : > { %p3641_p2 = pneg %p3640_p12  ;;  %p3647_p13 = por %p3646_p11, %p3645_p7 }
  0x8f   : > { %p3648_p5 = pnand %p3647_p13, %p3641_p2 }
  0x91   : > { %3651 = shalt.err (!%p3648_p5)
}
  0x92   : > { %s3652_s3 = scalar_lea.vmem %s4113_s11, 1024  ;;  %s3816_s20 = smov [#allocation3]  }
  0x93   : > { %p3653_p10 = scmp.ne.s32.totalorder %s4113_s11, %s3652_s3  ;;  %s3657_s0 = sshll.u32 %s3816_s20, 4  ;;  %s3658_s0 = int_to_ptr.vmem [resolvable:$false] %s3657_s0 }
  0x94   : > { %s3659_s14 = scalar_lea.vmem %s3658_s0, 2048  ;;  %p3660_p0 = scmp.lt.s32.totalorder %s4113_s11, %s3658_s0 }
  0x95   : > { %p3655_p1 = pnand %p3653_p10, %p4670_p9  ;;  %p3661_p8 = scmp.lt.s32.totalorder %s3659_s14, %s3652_s3 }
  0x97   : > { %p3656_p3 = pneg %p3655_p1  ;;  %p3662_p12 = por %p3661_p8, %p3660_p0 }
  0x99   : > { %p3663_p6 = pnand %p3662_p12, %p3656_p3 }
  0x9b   : > { %3666 = shalt.err (!%p3663_p6)
}
  0x9c   : > { %p4671_p2 = scmp.ne.s32.totalorder %s4657_s26, 0  ;;  %s3667_s21 = scalar_lea.hbm %s4077_s28, 2048 }
  0x9d   : > { %p3668_p4 = scmp.ne.s32.totalorder %s4077_s28, %s3667_s21  ;;  %s3672_s23 = scalar_lea.hbm %s4663_s12, 4096 }
  0x9e   : > { %3311 = dma.hbm_to_vmem [thread:$0]  (!%p4671_p2), %s4111_s30, 1024, %s4113_s11, %s620_s13, %s4668_s7, %s4668_s7, %s4667_s5  }
  0x9f   : > { %p3670_p7 = pnand %p3668_p4, %p4670_p9  ;;  %p3673_p13 = scmp.lt.u32.totalorder %s4077_s28, %s4663_s12 }
  0xa0   : > { %p3674_p5 = scmp.lt.u32.totalorder %s3672_s23, %s3667_s21  ;;  %p3676_p1 = scmp.lt.u32.totalorder %s3667_s21, %s4077_s28 }
  0xa1   : > { %p3671_p11 = pneg %p3670_p7 }
  0xa2   : > { %p3675_p10 = por %p3674_p5, %p3673_p13 }
  0xa4   : > { %p3677_p3 = por %p3676_p1, %p3675_p10 }
  0xa6   : > { %p3678_p0 = pnand %p3677_p3, %p3671_p11 }
  0xa8   : > { %3681 = shalt.err (!%p3678_p0)
}
  0xa9   : > { %s3682_s30 = scalar_lea.vmem %s4081_s19, 2048  ;;  %s3817_s11 = smov [#allocation8]  }
  0xaa   : > { %p3683_p8 = scmp.ne.s32.totalorder %s4081_s19, %s3682_s30  ;;  %s3687_s13 = sshll.u32 %s3817_s11, 4  ;;  %s3688_s13 = int_to_ptr.vmem [resolvable:$false] %s3687_s13 }
  0xab   : > { %s3689_s9 = scalar_lea.vmem %s3688_s13, 4096  ;;  %p3690_p4 = scmp.lt.s32.totalorder %s4081_s19, %s3688_s13 }
  0xac   : > { %p3685_p12 = pnand %p3683_p8, %p4670_p9  ;;  %p3691_p7 = scmp.lt.s32.totalorder %s3689_s9, %s3682_s30 }
  0xae   : > { %p3686_p6 = pneg %p3685_p12  ;;  %p3692_p13 = por %p3691_p7, %p3690_p4 }
  0xb0   : > { %p3693_p5 = pnand %p3692_p13, %p3686_p6 }
  0xb2   : > { %3696 = shalt.err (!%p3693_p5)
}
  0xb3   : > { %3317 = dma.hbm_to_vmem [thread:$0]  (!%p4671_p2), %s4077_s28, 2048, %s4081_s19, %s4042_s25, %s4668_s7, %s4668_s7, %s4667_s5  }
  0xb4   : > { %s2953_s3 = sshll.u32 %s3807_s24, 4  ;;  %s722_s20 = scalar_lea.vmem [#allocation9], %s3993_s1 }
  0xb5   : > { %s729_s0 = sshll.u32 %s722_s20, 4  ;;  %s4172_s17 = scalar_lea.hbm %s4605_s15, %s2953_s3  ;;  %s730_s0 = int_to_ptr.vmem [resolvable:$true] %s729_s0 }
  0xb6   : > { %s4672_s16 = sand.u32 1, %s3807_s24   ;;  %s3697_s10 = scalar_lea.hbm %s4172_s17, 16 }
  0xb7   : > { %s720_s23 = scalar_lea.sflag [#allocation10], %s4672_s16  ;;  %p3698_p11 = scmp.ne.s32.totalorder %s4172_s17, %s3697_s10 }
  0xb8   : > { %s3702_s28 = scalar_lea.hbm %s4605_s15, 32  ;;  %p3703_p3 = scmp.lt.u32.totalorder %s4172_s17, %s4605_s15 }
  0xb9   : > { %p3700_p10 = pnand %p3698_p11, %p4670_p9  ;;  %p3704_p0 = scmp.lt.u32.totalorder %s3702_s28, %s3697_s10 }
  0xba   : > { %p3706_p12 = scmp.lt.u32.totalorder %s3697_s10, %s4172_s17 }
  0xbb   : > { %p3701_p1 = pneg %p3700_p10  ;;  %p3705_p8 = por %p3704_p0, %p3703_p3 }
  0xbd   : > { %p3707_p6 = por %p3706_p12, %p3705_p8 }
  0xbf   : > { %p3708_p4 = pnand %p3707_p6, %p3701_p1 }
  0xc1   : > { %3711 = shalt.err (!%p3708_p4)
}
  0xc2   : > { %s3712_s24 = scalar_lea.vmem %s730_s0, 16  ;;  %s3818_s7 = smov [#allocation9]  }
  0xc3   : > { %p3713_p7 = scmp.ne.s32.totalorder %s730_s0, %s3712_s24  ;;  %s3717_s8 = sshll.u32 %s3818_s7, 4  ;;  %s3718_s8 = int_to_ptr.vmem [resolvable:$false] %s3717_s8 }
  0xc4   : > { %s3719_s30 = scalar_lea.vmem %s3718_s8, 32  ;;  %p3720_p11 = scmp.lt.s32.totalorder %s730_s0, %s3718_s8 }
  0xc5   : > { %p3715_p13 = pnand %p3713_p7, %p4670_p9  ;;  %p3721_p10 = scmp.lt.s32.totalorder %s3719_s30, %s3712_s24 }
  0xc7   : > { %p3716_p5 = pneg %p3715_p13  ;;  %p3722_p2 = por %p3721_p10, %p3720_p11 }
  0xc9   : > { %p3723_p0 = pnand %p3722_p2, %p3716_p5 }
  0xcb   : > { %3726 = shalt.err (!%p3723_p0)
}
  0xcc   : > { %p4673_p3 = scmp.ne.s32.totalorder %s4657_s26, 0  ;;  %p4674_p1 = scmp.ne.s32.totalorder %s4655_s29, 0 }
  0xcd   : > { %s4196_s27 = sand.u32 (!%p4674_p1), 1, %s3799_s22   ;;  %p4675_p9 = scmp.ne.s32.totalorder (!%p4674_p1), %s4654_s4, 0 }
  0xce   : > { %3320 = dma.hbm_to_vmem [thread:$0]  (!%p4673_p3), %s4172_s17, 16, %s730_s0, %s720_s23  }
  0xcf   : > { %738 = sbr.rel (%p4674_p1) target bundleno = 3612 (0xe1c), region = 100  ;;  %s2955_s11 = sshll.u32 (!%p4674_p1), %s4196_s27, 6 }
  0xd0   : > { %s741_s13 = scalar_lea.sflag (!%p4674_p1), [#allocation4], %s4196_s27  ;;  %s4200_s9 = scalar_lea.vmem (!%p4674_p1), [#allocation3], %s2955_s11 }
  0xd6   : > { %3770 = dma.done.wait (%p4675_p9), %s741_s13, 1024  }
  0xd7   : > { %3772 = vsyncadd (%p4675_p9), %s741_s13, 4294966272  ;;  %s749_s29 = sand.u32 1, %s3950_s2   ;;  %s2956_s26 = sshll.u32 %s4196_s27, 7 }
  0xd8   : > { %s750_s3 = scalar_lea.sflag [#allocation7], %s749_s29  ;;  %s4208_s20 = scalar_lea.vmem [#allocation6], %s2956_s26 }
  0xd9   : > { %3774 = dma.done.wait (%p4675_p9), %s750_s3, 4096  }
  0xda   : > { %3776 = vsyncadd (%p4675_p9), %s750_s3, 4294963200  ;;  %s4214_s0 = scalar_lea.vmem [#allocation8], %s2956_s26  ;;  %s768_s14 = scalar_lea.sflag [#allocation10], %s749_s29 }
  0xdb   : > { %3778 = dma.done.wait (%p4675_p9), %s768_s14, 16  }
  0xdc   : > { %3780 = vsyncadd (%p4675_p9), %s768_s14, 4294967280  ;;  %p4676_p2 = scmp.eq.s32.totalorder %s3950_s2, 0 }
  0xde   : > { %3782 = dma.done.wait (%p4676_p2), [#allocation10], 1024   ;;  %p4677_p8 = pmov %p4676_p2 }
  0xdf   : > { %p4678_p12 = pmov %p4676_p2 }
  0xe0   : > { %3784 = vsyncadd (%p4677_p8), [#allocation10], 4294966272 }
  0xe1   : > { %3786 = dma.done.wait (%p4678_p12), [#allocation13], 1024   ;;  %p4679_p6 = pmov %p4676_p2 }
  0xe2   : > { %p872_p4 = scmp.lt.s32.totalorder %s3950_s2, 1  ;;  %s4682_s30 = sld [smem:[#allocation28_spill]] }
  0xe3   : > { %3788 = vsyncadd (%p4679_p6), [#allocation13], 4294966272  ;;  %s4683_s26 = sld [smem:[#allocation33_spill]]  ;;  %s4684_s6 = sld [smem:[#allocation29_spill]] }
  0xe4   : > { %s4231_s17 = scalar_select %p872_p4, %s3950_s2, 1 }
  0xe5   : > { %s4685_s25 = sld [smem:[#allocation35_spill]]  ;;  %s4686_s7 = sld [smem:[#allocation37_spill]] }
  0xe6   : > { %s3279_s4 = smul.u32 192, %s4231_s17  ;;  %s2961_s16 = sshll.u32 %s4231_s17, 1 }
  0xe7   : > { %s3280_s1 = smul.u32 3, %s4231_s17  ;;  %s4687_s24 = sld [smem:[#allocation38_spill]] }
  0xe8   : > { %s4246_s11 = scalar_lea.vmem %s4682_s30, %s3279_s4  ;;  %p4688_p7 = scmp.ne.s32.totalorder %s3950_s2, 0 }
  0xe9   : > { %s889_s3 = scalar_lea.vmem %s4683_s26, %s4231_s17  ;;  %s4255_s12 = scalar_lea.vmem %s4684_s6, %s3280_s1 }
  0xea   : > { %904 = sbr.rel (%p4688_p7) target bundleno = 561 (0x231), region = 128  ;;  %s4689_s1 = sld [smem:[#allocation25_spill]] (!%p4688_p7) }
  0xeb   : > { %s4261_s28 = scalar_lea.vmem %s4685_s25, %s2961_s16  ;;  %s896_s4 = scalar_lea.vmem %s4686_s7, %s4231_s17 }
  0xec   : > { %s4691_s5 = sld [smem:[#allocation26_spill]] (!%p4688_p7)  ;;  %s4692_s30 = sld [smem:[#allocation27_spill]] (!%p4688_p7) }
  0xed   : > { %s899_s13 = scalar_lea.vmem %s4687_s24, %s4231_s17 }
  0xf0   : > { %s4690_s29 = smov (!%p4688_p7), %s4689_s1  ;;  %v905_v0 = vld [vmem:[%s4689_s1] sm:$0xff] (!%p4688_p7) }
  0xf1   : > { %v907_v1 = vld [vmem:[%s4690_s29 + $0x10] sm:$0xff]  ;;  %911 = vadd.xlane.f32.xlu0 %v905_v0  ;;  %v906_v2 = vld [vmem:[%s4690_s29 + $0x8] sm:$0xff]  ;;  %v908_v3 = vld [vmem:[%s4690_s29 + $0x18] sm:$0xff] }
  0xf2   : > { %915 = vadd.xlane.f32.xlu1 %v907_v1  ;;  %v2963_v33 = vld [vmem:[%s4691_s5] ss:$0 sm:$0xff] }
  0xf3   : > { %v2964_v35 = vld [vmem:[%s4692_s30] ss:$0 sm:$0xff] }
  0xf5   : > { %913 = vadd.xlane.f32.xlu0 %v906_v2 }
  0xf6   : > { %917 = vadd.xlane.f32.xlu1 %v908_v3 }
 0x17e   : > { %v912_v4 = vpop.xlane.xlu0 %911 }
 0x17f   : > { %v916_v5 = vpop.xlane.xlu1 %915  ;;  %v920_v6 = vmul.f32 0.0078125, %v912_v4 }
 0x180   : > { %v922_v7 = vmul.f32 0.0078125, %v916_v5 }
 0x181   : > { %v924_v8 = vsub.f32 %v905_v0, %v920_v6 }
 0x182   : > { %v926_v9 = vsub.f32 %v907_v1, %v922_v7  ;;  %v914_v10 = vpop.xlane.xlu0 %913 }
 0x183   : > { %v918_v11 = vpop.xlane.xlu1 %917  ;;  %v921_v12 = vmul.f32 0.0078125, %v914_v10  ;;  %v928_v13 = vmul.f32 %v924_v8, %v924_v8 }
 0x184   : > { %v923_v14 = vmul.f32 0.0078125, %v918_v11  ;;  %v930_v17 = vmul.f32 %v926_v9, %v926_v9 }
 0x185   : > { %v925_v15 = vsub.f32 %v906_v2, %v921_v12  ;;  %932 = vadd.xlane.f32.xlu0 %v928_v13 }
 0x186   : > { %v927_v16 = vsub.f32 %v908_v3, %v923_v14 }
 0x187   : > { %v929_v18 = vmul.f32 %v925_v15, %v925_v15 }
 0x188   : > { %v931_v19 = vmul.f32 %v927_v16, %v927_v16 }
 0x189   : > { %936 = vadd.xlane.f32.xlu0 %v930_v17  ;;  %934 = vadd.xlane.f32.xlu1 %v929_v18 }
 0x18d   : > { %938 = vadd.xlane.f32.xlu1 %v931_v19 }
 0x212   : > { %v933_v20 = vpop.xlane.xlu0 %932 }
 0x213   : > { %v940_v21 = vmul.f32 0.0078125, %v933_v20 }
 0x215   : > { %v944_v22 = vadd.f32 1e-05, %v940_v21 }
 0x216   : > { %v935_v23 = vpop.xlane.xlu1 %934  ;;  %v937_v24 = vpop.xlane.xlu0 %936 }
 0x217   : > { %3373 = vrsqrt.f32 %v944_v22  ;;  %v941_v25 = vmul.f32 0.0078125, %v935_v23  ;;  %v942_v26 = vmul.f32 0.0078125, %v937_v24 }
 0x219   : > { %v945_v27 = vadd.f32 1e-05, %v941_v25  ;;  %v946_v28 = vadd.f32 1e-05, %v942_v26 }
 0x21a   : > { %v939_v29 = vpop.xlane.xlu1 %938 }
 0x21b   : > { %3375 = vrsqrt.f32 %v945_v27  ;;  %v943_v30 = vmul.f32 0.0078125, %v939_v29 }
 0x21c   : > { %3377 = vrsqrt.f32 %v946_v28 }
 0x21d   : > { %v947_v31 = vadd.f32 1e-05, %v943_v30 }
 0x21f   : > { %3379 = vrsqrt.f32 %v947_v31 }
 0x221   : > { %v3374_v32 = vpop.eup %3373 }
 0x222   : > { %v952_v34 = vmul.f32 %v3374_v32, %v924_v8 }
 0x224   : > { %v962_v36 = vmul.f32 %v2963_v33, %v952_v34 }
 0x225   : > { %v3376_v37 = vpop.eup %3375 }
 0x226   : > { %v3378_v38 = vpop.eup %3377  ;;  %v972_v39 = vadd.f32 %v2964_v35, %v962_v36  ;;  %v953_v40 = vmul.f32 %v3376_v37, %v925_v15 }
 0x227   : > { %v954_v41 = vmul.f32 %v3378_v38, %v926_v9 }
 0x228   : > { %976 = vst [vmem:[#allocation2] sm:$0xff] %v972_v39  ;;  %v963_v42 = vmul.f32 %v2963_v33, %v953_v40 }
 0x229   : > { %v3380_v43 = vpop.eup %3379  ;;  %v964_v44 = vmul.f32 %v2963_v33, %v954_v41 }
 0x22a   : > { %v973_v45 = vadd.f32 %v2964_v35, %v963_v42  ;;  %v955_v46 = vmul.f32 %v3380_v43, %v927_v16 }
 0x22b   : > { %v974_v47 = vadd.f32 %v2964_v35, %v964_v44 }
 0x22c   : > { %977 = vst [vmem:[#allocation2 + $0x8] sm:$0xff] %v973_v45  ;;  %v965_v48 = vmul.f32 %v2963_v33, %v955_v46 }
 0x22d   : > { %978 = vst [vmem:[#allocation2 + $0x10] sm:$0xff] %v974_v47 }
 0x22e   : > { %v975_v49 = vadd.f32 %v2964_v35, %v965_v48 }
 0x230   : > { %979 = vst [vmem:[#allocation2 + $0x18] sm:$0xff] %v975_v49 }
 0x231 PF: > { %v3391_v50 = vld [vmem:[%s4246_s11 + $0x4] ss:$12 sps:$4 sm:$0xff]   ;;  %v3393_v51 = vld [vmem:[%s4246_s11] ss:$12 sps:$4 sm:$0xff]   ;;  %v3819_v52 = vmov 0   ;;  %v3820_v9 = vmov 0.0   ;;  %v1021_v18 = vlaneseq }
 0x232   : > { %1196 = vmatprep.mubr.bf16.mxu0 %v3819_v52  ;;  %1164 = vmatprep.subr.bf16.mxu0 %v3391_v50  ;;  %v3394_v53 = vld [vmem:[%s4246_s11 + $0x1c] ss:$12 sps:$4 sm:$0xff]   ;;  %v3396_v54 = vld [vmem:[%s4246_s11 + $0x18] ss:$12 sps:$4 sm:$0xff]   ;;  %v3397_v55 = vld [vmem:[%s4246_s11 + $0x34] ss:$12 sps:$4 sm:$0xff]  }
 0x233   : > { %1165 = vmatpush1.bf16.msra.mxu0 %v3393_v51  ;;  %v3399_v56 = vld [vmem:[%s4246_s11 + $0x30] ss:$12 sps:$4 sm:$0xff]   ;;  %v3400_v57 = vld [vmem:[%s4246_s11 + $0x4c] ss:$12 sps:$4 sm:$0xff]   ;;  %v4299_v58 = vld [vmem:[#allocation2] sm:$0xff]  ;;  %vm3821_vm0 = vmmov 0  }
 0x234   : > { %1166 = vmatprep.subr.bf16.mxu0 %v3394_v53  ;;  %v3402_v59 = vld [vmem:[%s4246_s11 + $0x48] ss:$12 sps:$4 sm:$0xff]   ;;  %v3403_v61 = vld [vmem:[%s4246_s11 + $0x64] ss:$12 sps:$4 sm:$0xff]   ;;  %v3405_v63 = vld [vmem:[%s4246_s11 + $0x60] ss:$12 sps:$4 sm:$0xff]  }
 0x235   : > { %v4302_v60 = vld [vmem:[#allocation2 + $0x8] sm:$0xff]  ;;  %v3408_v1 = vld [vmem:[%s4246_s11 + $0x78] ss:$12 sps:$4 sm:$0xff]   ;;  %v3409_v2 = vld [vmem:[%s4246_s11 + $0x94] ss:$12 sps:$4 sm:$0xff]   ;;  %v1022_v19 = vshrl.u32 %v1021_v18, 7 }
 0x236   : > { %v985_v62 = vpack.c.bf16 %v4302_v60, %v4299_v58  ;;  %v3406_v0 = vld [vmem:[%s4246_s11 + $0x7c] ss:$12 sps:$4 sm:$0xff]   ;;  %v3412_v4 = vld [vmem:[%s4246_s11 + $0xac] ss:$12 sps:$4 sm:$0xff]   ;;  %v4314_v6 = vld [vmem:[#allocation2 + $0x10] sm:$0xff]  ;;  %vm1269_vm1 = vcmask 523264  }
 0x237   : > { %1167 = vmatpush1.bf16.msra.mxu0 %v3396_v54  ;;  %v3411_v3 = vld [vmem:[%s4246_s11 + $0x90] ss:$12 sps:$4 sm:$0xff]   ;;  %v3414_v5 = vld [vmem:[%s4246_s11 + $0xa8] ss:$12 sps:$4 sm:$0xff]   ;;  %v3416_v11 = vld [vmem:[%s4246_s11 + $0x20] ss:$12 sps:$4 sm:$0xff]  }
 0x238   : > { %1168 = vmatprep.subr.bf16.mxu0 %v3397_v55  ;;  %3167 = vmatprep.mubr.bf16.mxu1 %v985_v62  ;;  %v4316_v7 = vld [vmem:[#allocation2 + $0x18] sm:$0xff]  ;;  %v3415_v10 = vld [vmem:[%s4246_s11 + $0x8] ss:$12 sps:$4 sm:$0xff]   ;;  %v3420_v15 = vld [vmem:[%s4246_s11 + $0x80] ss:$12 sps:$4 sm:$0xff]   ;;  %v4335_v20 = vsub.s32 0, %v1022_v19 }
 0x239   : > { %v986_v8 = vpack.c.bf16 %v4316_v7, %v4314_v6  ;;  %3151 = vmatprep.subr.bf16.mxu1 %v3415_v10  ;;  %v3417_v12 = vld [vmem:[%s4246_s11 + $0x38] ss:$12 sps:$4 sm:$0xff]   ;;  %v3418_v13 = vld [vmem:[%s4246_s11 + $0x50] ss:$12 sps:$4 sm:$0xff]   ;;  %v3419_v14 = vld [vmem:[%s4246_s11 + $0x68] ss:$12 sps:$4 sm:$0xff]  }
 0x23a   : > { %3152 = vmatpush3.bf16.msra.mxu1 %v3415_v10  ;;  %v3421_v16 = vld [vmem:[%s4246_s11 + $0x98] ss:$12 sps:$4 sm:$0xff]   ;;  %v3422_v17 = vld [vmem:[%s4246_s11 + $0xb0] ss:$12 sps:$4 sm:$0xff]   ;;  %v1019_v21 = vld [vmem:[%s4255_s12] sm:$0x7] }
 0x23b   : > { %1169 = vmatpush1.bf16.msra.mxu0 %v3399_v56  ;;  %3153 = vmatprep.subr.bf16.mxu1 %v3416_v11  ;;  %v4338_v22 = vsub.s32 1, %v1022_v19  ;;  %v1024_v23 = vrot.slane %v1019_v21, %v4335_v20  ;;  %s3822_s11 = smov 64   ;;  %v1031_v49 = vsub.s32 2, %v1022_v19  ;;  %s4693_s6 = sld [smem:[#allocation24_spill]]  ;;  %vm1325_vm2 = vcmask 130048  }
 0x23c   : > { %1170 = vmatprep.subr.bf16.mxu0 %v3400_v57  ;;  %s4694_s26 = sld [smem:[#allocation31_spill]]  ;;  %s4696_s16 = sld [smem:[#allocation32_spill]] }
 0x23d   : > { %v1028_v25 = vrot.slane %v1019_v21, %v4338_v22  ;;  %v1032_v51 = vrot.slane %v1019_v21, %v1031_v49  ;;  %s4701_s8 = scalar_lea.vmem [#allocation9], %s4196_s27  ;;  %p3043_p13 = scmp.ne.s32.totalorder %s3950_s2, 1 }
 0x23e   : > { %3154 = vmatpush3.bf16.msra.mxu1 %v3416_v11  ;;  %vm3824_vm3 = vmmov (!%p3043_p13), 0   ;;  %vm2491_vm4 = vcmask (!%p3043_p13), 1040384   ;;  %s4703_s12 = sld [smem:[#allocation41_spill]] (!%p3043_p13) }
 0x23f   : > { %1171 = vmatpush1.bf16.msra.mxu0 %v3402_v59  ;;  %3155 = vmatprep.subr.bf16.mxu1 %v3417_v12 }
 0x240   : > { %1172 = vmatprep.subr.bf16.mxu0 %v3403_v61 }
 0x242   : > { %3156 = vmatpush3.bf16.msra.mxu1 %v3417_v12  ;;  %s4695_s14 = scalar_lea.vmem %s4694_s26, %s4231_s17  ;;  %s4697_s23 = scalar_lea.vmem %s4696_s16, %s4231_s17 }
 0x243   : > { %1173 = vmatpush1.bf16.msra.mxu0 %v3405_v63  ;;  %3157 = vmatprep.subr.bf16.mxu1 %v3418_v13 }
 0x244   : > { %1174 = vmatprep.subr.bf16.mxu0 %v3406_v0 }
 0x246   : > { %3158 = vmatpush3.bf16.msra.mxu1 %v3418_v13 }
 0x247   : > { %1175 = vmatpush1.bf16.msra.mxu0 %v3408_v1  ;;  %3159 = vmatprep.subr.bf16.mxu1 %v3419_v14 }
 0x248   : > { %1176 = vmatprep.subr.bf16.mxu0 %v3409_v2 }
 0x24a   : > { %3160 = vmatpush3.bf16.msra.mxu1 %v3419_v14 }
 0x24b   : > { %1177 = vmatpush1.bf16.msra.mxu0 %v3411_v3  ;;  %3161 = vmatprep.subr.bf16.mxu1 %v3420_v15 }
 0x24c   : > { %1178 = vmatprep.subr.bf16.mxu0 %v3412_v4  ;;  %v984_v4 = vld [vmem:[%s4693_s6] sm:$0x3] }
 0x24e   : > { %3162 = vmatpush3.bf16.msra.mxu1 %v3420_v15 }
 0x24f   : > { %1179 = vmatpush1.bf16.msra.mxu0 %v3414_v5  ;;  %3163 = vmatprep.subr.bf16.mxu1 %v3421_v16  ;;  %v1322_v5 = vrot.slane %v984_v4, %v4335_v20 }
 0x250   : > { %3171 = vmatprep.subr.bf16.mxu0 %v3820_v9 }
 0x252   : > { %1197 = vmatmul.mubr.bf16.vlgmr.msra.gmra.mrb[0].mxu0 %v985_v62  ;;  %3164 = vmatpush3.bf16.msra.mxu1 %v3421_v16 }
 0x253   : > { %1206 = vmatprep.mubr.bf16.mxu0 %v3819_v52  ;;  %3165 = vmatprep.subr.bf16.mxu1 %v3422_v17 }
 0x256   : > { %3166 = vmatpush3.bf16.msra.mxu1 %v3422_v17 }
 0x257   : > { %3183 = vmatprep.subr.bf16.mxu1 %v3820_v9 }
 0x259   : > { %3168 = vmatmul.mubr.bf16.vlgmr.msra.gmra.mrb[0].mxu1 %v986_v8 }
 0x25a   : > { %1207 = vmatmul.mubr.bf16.gmra.mrb[4].mxu0 %v986_v8  ;;  %3185 = vmatprep.mubr.msk.bf16.mxu1 %vm3821_vm0, %v3820_v9 }
 0x25b   : > { %3173 = vmatprep.mubr.msk.bf16.mxu0 %vm3821_vm0, %v3820_v9 }
 0x325   : > { %v1198_v24 = vpop.f32.mrb[0].mxu0 }
 0x326   : > { %v1200_v26 = vpop.f32.mrb[1].mxu0  ;;  %v1199_v28 = vadd.f32 %v1198_v24, %v1024_v23 }
 0x327   : > { %v1202_v27 = vpop.f32.mrb[2].mxu0  ;;  %v1201_v31 = vadd.f32 %v1200_v26, %v1028_v25 }
 0x328   : > { %v1203_v29 = vadd.f32 %v1202_v27, %v1024_v23  ;;  %v1204_v30 = vpop.f32.mrb[3].mxu0 }
 0x329   : > { %v1205_v32 = vadd.f32 %v1204_v30, %v1028_v25  ;;  %v1586_v30 = vrot.slane %v984_v4, %v4338_v22 }
 0x32a   : > { %v1266_v33 = vpack.c.bf16 %v1203_v29, %v1199_v28 }
 0x32b   : > { %v1267_v34 = vpack.c.bf16 %v1205_v32, %v1201_v31 }
 0x32c   : > { %v3169_v53 = vpop.f32.mrb[0].mxu1 }
 0x32d   : > { %1397 = vrot.lane.b32.xlu0 %v1267_v34, %s3822_s11  ;;  %v1208_v35 = vpop.f32.mrb[4].mxu0  ;;  %v1274_v36 = vsel %vm1269_vm1, %v1267_v34, 0  ;;  %v1260_v55 = vadd.f32 %v3169_v53, %v1032_v51  ;;  %v1251_v56 = vpop.f32.mrb[1].mxu1 }
 0x32e   : > { %v1209_v37 = vadd.f32 %v1208_v35, %v1024_v23  ;;  %3172 = vmatpush3.bf16.xpose.msra.mxu0 %v1274_v36  ;;  %v1210_v38 = vpop.f32.mrb[5].mxu0  ;;  %v1252_v59 = vadd.f32 %v1251_v56, %v1032_v51  ;;  %v3170_v61 = vpop.f32.mrb[2].mxu1 }
 0x32f   : > { %v1211_v39 = vadd.f32 %v1210_v38, %v1028_v25  ;;  %v1212_v40 = vpop.f32.mrb[6].mxu0  ;;  %3177 = vmatprep.subr.bf16.mxu0 %v3820_v9  ;;  %v1263_v62 = vadd.f32 %v3170_v61, %v1032_v51  ;;  %v1254_v63 = vpop.f32.mrb[3].mxu1 }
 0x330   : > { %v1213_v41 = vadd.f32 %v1212_v40, %v1024_v23  ;;  %v1214_v42 = vpop.f32.mrb[7].mxu0  ;;  %v1255_v0 = vadd.f32 %v1254_v63, %v1032_v51 }
 0x331   : > { %v1215_v43 = vadd.f32 %v1214_v42, %v1028_v25  ;;  %1394 = vrot.lane.b32.xlu0 %v1266_v33, %s3822_s11  ;;  %v4362_v1 = vpack.c.bf16 %v1263_v62, %v1260_v55 }
 0x332   : > { %v1531_v44 = vpack.c.bf16 %v1213_v41, %v1209_v37  ;;  %v4364_v2 = vpack.c.bf16 %v1255_v0, %v1252_v59 }
 0x333   : > { %v1532_v45 = vpack.c.bf16 %v1215_v43, %v1211_v39 }
 0x335   : > { %3174 = vmatmul.mubr.msk.bf16.vlgmr.msra.gmra.mrb[8].mxu0 %vm1269_vm1, %v1266_v33  ;;  %1660 = vrot.lane.b32.xlu1 %v1532_v45, %s3822_s11  ;;  %v1538_v50 = vsel %vm1269_vm1, %v1532_v45, 0 }
 0x336   : > { %3179 = vmatprep.mubr.msk.bf16.mxu0 %vm3821_vm0, %v3820_v9  ;;  %3178 = vmatpush3.bf16.msra.mxu0 %v4364_v2 }
 0x337   : > { %3189 = vmatprep.subr.bf16.mxu0 %v3820_v9 }
 0x339   : > { %1657 = vrot.lane.b32.xlu1 %v1531_v44, %s3822_s11 }
 0x39f   : > { %v1398_v46 = vpop.permute.xlu0 %1397 }
 0x3a0   : > { %v1403_v47 = vsel %vm1269_vm1, %v1398_v46, 0 }
 0x3a1   : > { %3184 = vmatpush3.bf16.xpose.msra.mxu1 %v1403_v47 }
 0x3a2   : > { %3195 = vmatprep.subr.bf16.mxu1 %v3820_v9 }
 0x3a3   : > { %v1395_v48 = vpop.permute.xlu0 %1394 }
 0x3a7   : > { %v1661_v54 = vpop.permute.xlu1 %1660 }
 0x3a8   : > { %3186 = vmatmul.mubr.msk.bf16.vlgmr.msra.gmra.mrb[4].mxu1 %vm1269_vm1, %v1395_v48  ;;  %v1666_v57 = vsel %vm1269_vm1, %v1661_v54, 0 }
 0x3a9   : > { %3196 = vmatpush3.bf16.xpose.msra.mxu1 %v1538_v50  ;;  %3197 = vmatprep.mubr.msk.bf16.mxu1 %vm3821_vm0, %v3820_v9 }
 0x3aa   : > { %3207 = vmatprep.subr.bf16.mxu1 %v3820_v9 }
 0x3ab   : > { %v1658_v3 = vpop.permute.xlu1 %1657 }
 0x3b0   : > { %3198 = vmatmul.mubr.msk.bf16.vlgmr.msra.gmra.mrb[8].mxu1 %vm1269_vm1, %v1531_v44 }
 0x3b1   : > { %3208 = vmatpush3.bf16.xpose.msra.mxu1 %v1666_v57  ;;  %3209 = vmatprep.mubr.msk.bf16.mxu1 %vm3821_vm0, %v3820_v9 }
 0x3b8   : > { %3210 = vmatmul.mubr.msk.bf16.vlgmr.msra.gmra.mrb[12].mxu1 %vm1269_vm1, %v1658_v3 }
 0x408   : > { %v1310_v8 = vpop.f32.mrb[8].mxu0 }
 0x409   : > { %v1317_v10 = vmul.f32 0.125, %v1310_v8  ;;  %v3175_v11 = vpop.f32.mrb[9].mxu0 }
 0x40a   : > { %v1313_v12 = vpop.f32.mrb[10].mxu0 }
 0x40b   : > { %v1318_v13 = vmul.f32 0.125, %v1313_v12  ;;  %v3176_v14 = vpop.f32.mrb[11].mxu0  ;;  %v1323_v15 = vadd.f32 %v1322_v5, %v1317_v10 }
 0x40d   : > { %v1326_v16 = vsel %vm1325_vm2, %v1323_v15, -inf  ;;  %v1324_v17 = vadd.f32 %v1322_v5, %v1318_v13 }
 0x40e   : > { %1327 = vmax.xlane.f32.xlu0 %v1326_v16 }
 0x40f   : > { %v1329_v18 = vsel %vm1325_vm2, %v1324_v17, -inf }
 0x410   : > { %1330 = vmax.xlane.f32.xlu1 %v1329_v18 }
 0x47b   : > { %v1439_v19 = vpop.f32.mrb[4].mxu1 }
 0x47c   : > { %v1446_v21 = vmul.f32 0.125, %v1439_v19  ;;  %v3187_v23 = vpop.f32.mrb[5].mxu1 }
 0x47d   : > { %v1442_v24 = vpop.f32.mrb[6].mxu1 }
 0x47e   : > { %v1447_v25 = vmul.f32 0.125, %v1442_v24  ;;  %v3188_v26 = vpop.f32.mrb[7].mxu1  ;;  %v1448_v27 = vadd.f32 %v1446_v21, %v1322_v5 }
 0x480   : > { %v1450_v28 = vsel %vm1325_vm2, %v1448_v27, -inf  ;;  %v1449_v29 = vadd.f32 %v1447_v25, %v1322_v5 }
 0x481   : > { %1451 = vmax.xlane.f32.xlu0 %v1450_v28 }
 0x482   : > { %v1453_v34 = vsel %vm1325_vm2, %v1449_v29, -inf }
 0x483   : > { %v1574_v31 = vpop.f32.mrb[8].mxu1 }
 0x484   : > { %v1581_v32 = vmul.f32 0.125, %v1574_v31  ;;  %v3199_v33 = vpop.f32.mrb[9].mxu1 }
 0x485   : > { %v1577_v35 = vpop.f32.mrb[10].mxu1  ;;  %1454 = vmax.xlane.f32.xlu0 %v1453_v34 }
 0x486   : > { %v1582_v36 = vmul.f32 0.125, %v1577_v35  ;;  %v3200_v37 = vpop.f32.mrb[11].mxu1  ;;  %v1587_v38 = vadd.f32 %v1586_v30, %v1581_v32 }
 0x488   : > { %v1589_v39 = vsel %vm1325_vm2, %v1587_v38, -inf  ;;  %v1588_v40 = vadd.f32 %v1586_v30, %v1582_v36 }
 0x489   : > { %1590 = vmax.xlane.f32.xlu1 %v1589_v39 }
 0x48a   : > { %v1592_v41 = vsel %vm1325_vm2, %v1588_v40, -inf }
 0x48b   : > { %v1702_v42 = vpop.f32.mrb[12].mxu1  ;;  %1593 = vmax.xlane.f32.xlu0 %v1592_v41 }
 0x48c   : > { %v1709_v43 = vmul.f32 0.125, %v1702_v42  ;;  %v3211_v44 = vpop.f32.mrb[13].mxu1 }
 0x48d   : > { %v1705_v45 = vpop.f32.mrb[14].mxu1 }
 0x48e   : > { %v1710_v46 = vmul.f32 0.125, %v1705_v45  ;;  %v3212_v47 = vpop.f32.mrb[15].mxu1  ;;  %v1711_v48 = vadd.f32 %v1709_v43, %v1586_v30 }
 0x490   : > { %v1713_v49 = vsel %vm1325_vm2, %v1711_v48, -inf  ;;  %v1712_v50 = vadd.f32 %v1710_v46, %v1586_v30 }
 0x491   : > { %1714 = vmax.xlane.f32.xlu1 %v1713_v49 }
 0x492   : > { %v1716_v51 = vsel %vm1325_vm2, %v1712_v50, -inf }
 0x493   : > { %1717 = vmax.xlane.f32.xlu0 %v1716_v51 }
 0x49b   : > { %v1328_v53 = vpop.xlane.xlu0 %1327 }
 0x49c   : > { %v1332_v54 = vsub.f32 %v1323_v15, %v1328_v53 }
 0x49d   : > { %v1331_v55 = vpop.xlane.xlu1 %1330 }
 0x49e   : > { %v1334_v56 = vmul.f32 1.442695, %v1332_v54  ;;  %v1333_v57 = vsub.f32 %v1324_v17, %v1331_v55 }
 0x4a0   : > { %3471 = vpow2.f32 %v1334_v56  ;;  %v1336_v59 = vmul.f32 1.442695, %v1333_v57 }
 0x4a2   : > { %3473 = vpow2.f32 %v1336_v59 }
 0x4aa   : > { %v3472_v61 = vpop.eup %3471 }
 0x4ab   : > { %v1338_v62 = vsel %vm1325_vm2, %v3472_v61, 0.0 }
 0x4ac   : > { %v3474_v63 = vpop.eup %3473  ;;  %1339 = vadd.xlane.f32.xlu1 %v1338_v62 }
 0x4ad   : > { %v1341_v0 = vsel %vm1325_vm2, %v3474_v63, 0.0 }
 0x4ae   : > { %1342 = vadd.xlane.f32.xlu0 %v1341_v0 }
 0x50e   : > { %v1452_v3 = vpop.xlane.xlu0 %1451 }
 0x50f   : > { %v1456_v4 = vsub.f32 %v1448_v27, %v1452_v3 }
 0x511   : > { %v1458_v5 = vmul.f32 1.442695, %v1456_v4 }
 0x512   : > { %v1455_v8 = vpop.xlane.xlu0 %1454 }
 0x513   : > { %3475 = vpow2.f32 %v1458_v5  ;;  %v1457_v10 = vsub.f32 %v1449_v29, %v1455_v8 }
 0x515   : > { %v1460_v11 = vmul.f32 1.442695, %v1457_v10 }
 0x516   : > { %v1591_v12 = vpop.xlane.xlu1 %1590 }
 0x517   : > { %3477 = vpow2.f32 %v1460_v11  ;;  %v1595_v13 = vsub.f32 %v1587_v38, %v1591_v12 }
 0x518   : > { %v1594_v14 = vpop.xlane.xlu0 %1593 }
 0x519   : > { %v1597_v15 = vmul.f32 1.442695, %v1595_v13  ;;  %v1596_v16 = vsub.f32 %v1588_v40, %v1594_v14  ;;  %v3423_v14 = vld [vmem:[%s4200_s9] sm:$0xff]  }
 0x51a   : > { %3219 = vmatprep.subr.bf16.mxu1 %v3423_v14 }
 0x51b   : > { %3479 = vpow2.f32 %v1597_v15  ;;  %v1599_v17 = vmul.f32 1.442695, %v1596_v16  ;;  %v3424_v15 = vld [vmem:[%s4200_s9 + $0x8] sm:$0xff]   ;;  %3220 = vmatpush3.bf16.msra.mxu1 %v3423_v14  ;;  %v3426_v16 = vld [vmem:[%s4200_s9 + $0x18] sm:$0xff]  }
 0x51c   : > { %3221 = vmatprep.subr.bf16.mxu1 %v3424_v15 }
 0x51d   : > { %v3476_v18 = vpop.eup %3475  ;;  %3481 = vpow2.f32 %v1599_v17  ;;  %v3427_v17 = vld [vmem:[%s4200_s9 + $0x20] sm:$0xff]  }
 0x51e   : > { %v1715_v19 = vpop.xlane.xlu1 %1714  ;;  %v1462_v21 = vsel %vm1325_vm2, %v3476_v18, 0.0 }
 0x51f   : > { %v1719_v23 = vsub.f32 %v1711_v48, %v1715_v19  ;;  %1463 = vadd.xlane.f32.xlu1 %v1462_v21  ;;  %3222 = vmatpush3.bf16.msra.mxu1 %v3424_v15  ;;  %v3429_v21 = vld [vmem:[%s4200_s9 + $0x30] sm:$0xff]  }
 0x520   : > { %v1718_v24 = vpop.xlane.xlu0 %1717 }
 0x521   : > { %v3478_v25 = vpop.eup %3477  ;;  %v1721_v26 = vmul.f32 1.442695, %v1719_v23  ;;  %v1720_v27 = vsub.f32 %v1712_v50, %v1718_v24 }
 0x522   : > { %v1465_v28 = vsel %vm1325_vm2, %v3478_v25, 0.0 }
 0x523   : > { %3483 = vpow2.f32 %v1721_v26  ;;  %v1723_v29 = vmul.f32 1.442695, %v1720_v27  ;;  %1466 = vadd.xlane.f32.xlu0 %v1465_v28  ;;  %v3430_v28 = vld [vmem:[%s4200_s9 + $0x38] sm:$0xff]  }
 0x525   : > { %v3480_v30 = vpop.eup %3479  ;;  %3485 = vpow2.f32 %v1723_v29 }
 0x526   : > { %v1601_v31 = vsel %vm1325_vm2, %v3480_v30, 0.0 }
 0x527   : > { %v3482_v32 = vpop.eup %3481  ;;  %1602 = vadd.xlane.f32.xlu1 %v1601_v31 }
 0x528   : > { %v1604_v33 = vsel %vm1325_vm2, %v3482_v32, 0.0 }
 0x529   : > { %1605 = vadd.xlane.f32.xlu0 %v1604_v33 }
 0x52d   : > { %v3484_v34 = vpop.eup %3483 }
 0x52e   : > { %v1725_v35 = vsel %vm1325_vm2, %v3484_v34, 0.0 }
 0x52f   : > { %v3486_v36 = vpop.eup %3485  ;;  %1726 = vadd.xlane.f32.xlu1 %v1725_v35 }
 0x530   : > { %v1728_v37 = vsel %vm1325_vm2, %v3486_v36, 0.0 }
 0x531   : > { %1729 = vadd.xlane.f32.xlu0 %v1728_v37 }
 0x539   : > { %v1340_v38 = vpop.xlane.xlu1 %1339 }
 0x53a   : > { %3487 = vrcp.f32 %v1340_v38 }
 0x53b   : > { %v1343_v39 = vpop.xlane.xlu0 %1342 }
 0x53c   : > { %3489 = vrcp.f32 %v1343_v39 }
 0x540   : > { %1474 = vrot.lane.b32.xlu1 %v4364_v2, %s3822_s11 }
 0x544   : > { %v3488_v40 = vpop.eup %3487 }
 0x545   : > { %v1346_v42 = vmul.f32 %v3488_v40, %v3472_v61 }
 0x546   : > { %v3490_v41 = vpop.eup %3489 }
 0x547   : > { %v1347_v43 = vmul.f32 %v3490_v41, %v3474_v63  ;;  %1737 = vrot.lane.b32.xlu0 %v4362_v1, %s3822_s11 }
 0x549   : > { %v1348_v44 = vpack.c.bf16 %v1347_v43, %v1346_v42 }
 0x54b   : > { %3180 = vmatmul.mubr.msk.bf16.vlgmr.msra.gmra.mrb[12].mxu0 %vm1325_vm2, %v1348_v44 }
 0x54c   : > { %3191 = vmatprep.mubr.msk.bf16.mxu0 %vm3821_vm0, %v3820_v9 }
 0x5ac   : > { %v1464_v45 = vpop.xlane.xlu1 %1463 }
 0x5b0   : > { %v1467_v46 = vpop.xlane.xlu0 %1466 }
 0x5b1   : > { %3491 = vrcp.f32 %v1467_v46 }
 0x5b2   : > { %3493 = vrcp.f32 %v1464_v45 }
 0x5b4   : > { %v1603_v48 = vpop.xlane.xlu1 %1602 }
 0x5b6   : > { %v1606_v47 = vpop.xlane.xlu0 %1605 }
 0x5b7   : > { %3495 = vrcp.f32 %v1606_v47 }
 0x5b8   : > { %3497 = vrcp.f32 %v1603_v48 }
 0x5bb   : > { %v3492_v2 = vpop.eup %3491 }
 0x5bc   : > { %v1727_v49 = vpop.xlane.xlu1 %1726  ;;  %v3494_v50 = vpop.eup %3493  ;;  %v1471_v51 = vmul.f32 %v3492_v2, %v3478_v25  ;;  %v2997_v2 = vld [vmem:[%s4695_s14] ss:$0 sm:$0xff] }
 0x5bd   : > { %v1470_v54 = vmul.f32 %v3494_v50, %v3476_v18  ;;  %v3428_v18 = vld [vmem:[%s4200_s9 + $0x28] sm:$0xff]  }
 0x5be   : > { %v1730_v53 = vpop.xlane.xlu0 %1729 }
 0x5bf   : > { %3499 = vrcp.f32 %v1730_v53  ;;  %v1472_v56 = vpack.c.bf16 %v1471_v51, %v1470_v54 }
 0x5c0   : > { %v1475_v55 = vpop.permute.xlu1 %1474  ;;  %3501 = vrcp.f32 %v1727_v49 }
 0x5c1   : > { %3190 = vmatpush3.bf16.msra.mxu0 %v1475_v55  ;;  %v3496_v57 = vpop.eup %3495 }
 0x5c2   : > { %3201 = vmatprep.subr.bf16.mxu0 %v3820_v9  ;;  %v3498_v59 = vpop.eup %3497  ;;  %v1610_v61 = vmul.f32 %v3496_v57, %v3482_v32  ;;  %v1738_v3 = vpop.permute.xlu0 %1737 }
 0x5c3   : > { %v1609_v62 = vmul.f32 %v3498_v59, %v3480_v30 }
 0x5c4   : > { %3192 = vmatmul.mubr.msk.bf16.vlgmr.msra.gmra.mrb[16].mxu0 %vm1325_vm2, %v1472_v56 }
 0x5c5   : > { %3202 = vmatpush3.bf16.msra.mxu0 %v4362_v1  ;;  %3203 = vmatprep.mubr.msk.bf16.mxu0 %vm3821_vm0, %v3820_v9  ;;  %v1611_v63 = vpack.c.bf16 %v1610_v61, %v1609_v62 }
 0x5c6   : > { %3213 = vmatprep.subr.bf16.mxu0 %v3820_v9 }
 0x5c9   : > { %v3500_v0 = vpop.eup %3499 }
 0x5ca   : > { %v3502_v4 = vpop.eup %3501  ;;  %v1734_v1 = vmul.f32 %v3500_v0, %v3486_v36  ;;  %v3431_v0 = vld [vmem:[%s4208_s20] ss:$8 sps:$4 sm:$0xff]  }
 0x5cb   : > { %v1733_v5 = vmul.f32 %v3502_v4, %v3484_v34  ;;  %v3436_v4 = vld [vmem:[%s4208_s20 + $0x14] ss:$8 sps:$4 sm:$0xff]  }
 0x5cc   : > { %3204 = vmatmul.mubr.msk.bf16.vlgmr.msra.gmra.mrb[20].mxu0 %vm1325_vm2, %v1611_v63 }
 0x5cd   : > { %3214 = vmatpush3.bf16.msra.mxu0 %v1738_v3  ;;  %3215 = vmatprep.mubr.msk.bf16.mxu0 %vm3821_vm0, %v3820_v9  ;;  %v1735_v8 = vpack.c.bf16 %v1734_v1, %v1733_v5  ;;  %v3425_v9 = vld [vmem:[%s4200_s9 + $0x10] sm:$0xff]   ;;  %v3433_v3 = vld [vmem:[%s4208_s20 + $0x4] ss:$8 sps:$4 sm:$0xff]  }
 0x5ce   : > { %3223 = vmatprep.subr.bf16.mxu1 %v3425_v9  ;;  %2097 = vmatprep.subr.bf16.mxu0 %v3433_v3  ;;  %v3434_v1 = vld [vmem:[%s4208_s20 + $0x10] ss:$8 sps:$4 sm:$0xff]  }
 0x5cf   : > { %3224 = vmatpush3.bf16.msra.mxu1 %v3425_v9 }
 0x5d0   : > { %3225 = vmatprep.subr.bf16.mxu1 %v3426_v16 }
 0x5d3   : > { %3226 = vmatpush3.bf16.msra.mxu1 %v3426_v16 }
 0x5d4   : > { %3216 = vmatmul.mubr.msk.bf16.vlgmr.msra.gmra.mrb[24].mxu0 %vm1325_vm2, %v1735_v8  ;;  %3227 = vmatprep.subr.bf16.mxu1 %v3427_v17 }
 0x5d5   : > { %2129 = vmatprep.mubr.bf16.mxu0 %v3819_v52  ;;  %2098 = vmatpush1.bf16.msra.mxu0 %v3431_v0 }
 0x5d6   : > { %2099 = vmatprep.subr.bf16.mxu0 %v3436_v4 }
 0x5d7   : > { %3228 = vmatpush3.bf16.msra.mxu1 %v3427_v17 }
 0x5d8   : > { %3229 = vmatprep.subr.bf16.mxu1 %v3428_v18 }
 0x5d9   : > { %2100 = vmatpush1.bf16.msra.mxu0 %v3434_v1  ;;  %v3455_v1 = vld [vmem:[%s4214_s0 + $0x40] sm:$0xff]  }
 0x5db   : > { %3230 = vmatpush3.bf16.msra.mxu1 %v3428_v18 }
 0x5dc   : > { %3231 = vmatprep.subr.bf16.mxu1 %v3429_v21 }
 0x5df   : > { %3232 = vmatpush3.bf16.msra.mxu1 %v3429_v21  ;;  %v3437_v21 = vld [vmem:[%s4208_s20 + $0x20] ss:$8 sps:$4 sm:$0xff]  }
 0x5e0   : > { %3233 = vmatprep.subr.bf16.mxu1 %v3430_v28 }
 0x5e3   : > { %3234 = vmatpush3.bf16.msra.mxu1 %v3430_v28  ;;  %v3446_v28 = vld [vmem:[%s4208_s20 + $0x50] ss:$8 sps:$4 sm:$0xff]  }
 0x5e4   : > { %3105 = vmatprep.subr.bf16.mxu1 %v3455_v1 }
 0x61e   : > { %v1386_v10 = vpop.f32.mrb[12].mxu0 }
 0x61f   : > { %v3181_v11 = vpop.f32.mrb[13].mxu0 }
 0x620   : > { %v1389_v12 = vpop.f32.mrb[14].mxu0 }
 0x621   : > { %v3182_v13 = vpop.f32.mrb[15].mxu0 }
 0x697   : > { %v1514_v19 = vpop.f32.mrb[16].mxu0 }
 0x698   : > { %v3193_v23 = vpop.f32.mrb[17].mxu0 }
 0x699   : > { %v1517_v24 = vpop.f32.mrb[18].mxu0  ;;  %v3442_v23 = vld [vmem:[%s4208_s20 + $0x34] ss:$8 sps:$4 sm:$0xff]  }
 0x69a   : > { %v3381_v25 = vpack.i.bf16 %v1517_v24, %v1514_v19  ;;  %v3194_v26 = vpop.f32.mrb[19].mxu0  ;;  %v3439_v19 = vld [vmem:[%s4208_s20 + $0x24] ss:$8 sps:$4 sm:$0xff]   ;;  %v3440_v24 = vld [vmem:[%s4208_s20 + $0x30] ss:$8 sps:$4 sm:$0xff]  }
 0x69b   : > { %2101 = vmatprep.subr.bf16.mxu0 %v3439_v19  ;;  %v3443_v26 = vld [vmem:[%s4208_s20 + $0x40] ss:$8 sps:$4 sm:$0xff]  }
 0x69c   : > { %3382 = vrot.lane.b32.xlu1 %v3381_v25, %s3822_s11  ;;  %2102 = vmatpush1.bf16.msra.mxu0 %v3437_v21  ;;  %v3445_v25 = vld [vmem:[%s4208_s20 + $0x44] ss:$8 sps:$4 sm:$0xff]  }
 0x69d   : > { %2103 = vmatprep.subr.bf16.mxu0 %v3442_v23 }
 0x69f   : > { %v1649_v27 = vpop.f32.mrb[20].mxu0 }
 0x6a0   : > { %v3205_v29 = vpop.f32.mrb[21].mxu0  ;;  %2104 = vmatpush1.bf16.msra.mxu0 %v3440_v24 }
 0x6a1   : > { %v1652_v30 = vpop.f32.mrb[22].mxu0  ;;  %2105 = vmatprep.subr.bf16.mxu0 %v3445_v25  ;;  %v3451_v29 = vld [vmem:[%s4208_s20 + $0x64] ss:$8 sps:$4 sm:$0xff]  }
 0x6a2   : > { %v3206_v31 = vpop.f32.mrb[23].mxu0 }
 0x6a3   : > { %v3454_v31 = vld [vmem:[%s4208_s20 + $0x74] ss:$8 sps:$4 sm:$0xff]  }
 0x6a4   : > { %2106 = vmatpush1.bf16.msra.mxu0 %v3443_v26 }
 0x6a7   : > { %v1777_v32 = vpop.f32.mrb[24].mxu0 }
 0x6a8   : > { %v3217_v33 = vpop.f32.mrb[25].mxu0 }
 0x6a9   : > { %v1780_v34 = vpop.f32.mrb[26].mxu0 }
 0x6aa   : > { %v3386_v35 = vpack.i.bf16 %v1780_v34, %v1777_v32  ;;  %v3218_v36 = vpop.f32.mrb[27].mxu0  ;;  %v3452_v32 = vld [vmem:[%s4208_s20 + $0x70] ss:$8 sps:$4 sm:$0xff]  }
 0x6ac   : > { %3387 = vrot.lane.b32.xlu1 %v3386_v35, %s3822_s11 }
 0x70e   : > { %v3383_v37 = vpop.permute.xlu1 %3382 }
 0x70f   : > { %v3385_v38 = vunpack.i.h.bf16 %v3383_v37  ;;  %v3384_v39 = vunpack.i.l.bf16 %v3383_v37 }
 0x711   : > { %v1529_v40 = vsel %vm1269_vm1, %v1386_v10, %v3384_v39  ;;  %v1530_v41 = vsel %vm1269_vm1, %v1389_v12, %v3385_v38 }
 0x712   : > { %v1794_v42 = vpack.c.bf16 %v1530_v41, %v1529_v40 }
 0x714   : > { %3235 = vmatprep.mubr.bf16.mxu1 %v1794_v42 }
 0x71e   : > { %v3388_v43 = vpop.permute.xlu1 %3387 }
 0x71f   : > { %v3390_v44 = vunpack.i.h.bf16 %v3388_v43  ;;  %v3389_v45 = vunpack.i.l.bf16 %v3388_v43 }
 0x721   : > { %v1793_v46 = vsel %vm1269_vm1, %v1652_v30, %v3390_v44  ;;  %v1792_v47 = vsel %vm1269_vm1, %v1649_v27, %v3389_v45  ;;  %v3448_v27 = vld [vmem:[%s4208_s20 + $0x54] ss:$8 sps:$4 sm:$0xff]   ;;  %v3449_v30 = vld [vmem:[%s4208_s20 + $0x60] ss:$8 sps:$4 sm:$0xff]  }
 0x722   : > { %v1795_v48 = vpack.c.bf16 %v1793_v46, %v1792_v47  ;;  %2107 = vmatprep.subr.bf16.mxu0 %v3448_v27  ;;  %v3006_v46 = vld [vmem:[%s4697_s23] ss:$0 sm:$0xff] }
 0x723   : > { %2108 = vmatpush1.bf16.msra.mxu0 %v3446_v28 }
 0x724   : > { %3236 = vmatmul.mubr.bf16.vlgmr.msra.gmra.mrb[16].mxu1 %v1795_v48  ;;  %2109 = vmatprep.subr.bf16.mxu0 %v3451_v29 }
 0x727   : > { %2110 = vmatpush1.bf16.msra.mxu0 %v3449_v30 }
 0x728   : > { %2111 = vmatprep.subr.bf16.mxu0 %v3454_v31 }
 0x72b   : > { %2112 = vmatpush1.bf16.msra.mxu0 %v3452_v32 }
 0x7f7   : > { %v3237_v49 = vpop.f32.mrb[16].mxu1 }
 0x7f8   : > { %v1901_v50 = vpop.f32.mrb[17].mxu1  ;;  %v1910_v55 = vadd.f32 %v3237_v49, %v2997_v2 }
 0x7f9   : > { %v1902_v51 = vadd.f32 %v2997_v2, %v1901_v50  ;;  %v3238_v53 = vpop.f32.mrb[18].mxu1 }
 0x7fa   : > { %v1904_v54 = vpop.f32.mrb[19].mxu1  ;;  %v1913_v61 = vadd.f32 %v3238_v53, %v2997_v2  ;;  %v1918_v62 = vadd.f32 %v1910_v55, %v4314_v6 }
 0x7fb   : > { %v1905_v56 = vadd.f32 %v2997_v2, %v1904_v54  ;;  %v1916_v57 = vadd.f32 %v1902_v51, %v4299_v58  ;;  %v3007_v51 = vld [vmem:[%s889_s3] ss:$0 sm:$0xff] }
 0x7fc   : > { %v1919_v63 = vadd.f32 %v1913_v61, %v4316_v7 }
 0x7fd   : > { %1922 = vadd.xlane.f32.xlu0 %v1916_v57  ;;  %v1917_v59 = vadd.f32 %v1905_v56, %v4302_v60 }
 0x7ff   : > { %1924 = vadd.xlane.f32.xlu1 %v1917_v59 }
 0x801   : > { %1926 = vadd.xlane.f32.xlu0 %v1918_v62 }
 0x805   : > { %1928 = vadd.xlane.f32.xlu0 %v1919_v63 }
 0x88a   : > { %v1923_v58 = vpop.xlane.xlu0 %1922 }
 0x88b   : > { %v1931_v5 = vmul.f32 0.0078125, %v1923_v58  ;;  %v3456_v58 = vld [vmem:[%s4214_s0] sm:$0xff]  }
 0x88c   : > { %v1925_v8 = vpop.xlane.xlu1 %1924  ;;  %3106 = vmatpush3.bf16.msra.mxu1 %v3456_v58 }
 0x88d   : > { %v1935_v60 = vsub.f32 %v1916_v57, %v1931_v5  ;;  %v1932_v10 = vmul.f32 0.0078125, %v1925_v8  ;;  %v3457_v5 = vld [vmem:[%s4214_s0 + $0x48] sm:$0xff]  }
 0x88e   : > { %v1927_v11 = vpop.xlane.xlu0 %1926  ;;  %v3458_v8 = vld [vmem:[%s4214_s0 + $0x8] sm:$0xff]   ;;  %3107 = vmatprep.subr.bf16.mxu1 %v3457_v5 }
 0x88f   : > { %v1936_v6 = vsub.f32 %v1917_v59, %v1932_v10  ;;  %v1933_v12 = vmul.f32 0.0078125, %v1927_v11  ;;  %v1939_v7 = vmul.f32 %v1935_v60, %v1935_v60  ;;  %v3461_v10 = vld [vmem:[%s4214_s0 + $0x58] sm:$0xff]  }
 0x890   : > { %3108 = vmatpush3.bf16.msra.mxu1 %v3458_v8  ;;  %v3462_v11 = vld [vmem:[%s4214_s0 + $0x18] sm:$0xff]  }
 0x891   : > { %v1937_v13 = vsub.f32 %v1918_v62, %v1933_v12  ;;  %1943 = vadd.xlane.f32.xlu1 %v1939_v7  ;;  %v1940_v14 = vmul.f32 %v1936_v6, %v1936_v6  ;;  %v3464_v12 = vld [vmem:[%s4214_s0 + $0x20] sm:$0xff]   ;;  %v3465_v7 = vld [vmem:[%s4214_s0 + $0x68] sm:$0xff]  }
 0x892   : > { %v1929_v15 = vpop.xlane.xlu0 %1928 }
 0x893   : > { %v1934_v9 = vmul.f32 0.0078125, %v1929_v15  ;;  %1945 = vadd.xlane.f32.xlu0 %v1940_v14  ;;  %v1941_v16 = vmul.f32 %v1937_v13, %v1937_v13  ;;  %v3467_v14 = vld [vmem:[%s4214_s0 + $0x70] sm:$0xff]  }
 0x894   : > { %v3468_v15 = vld [vmem:[%s4214_s0 + $0x30] sm:$0xff]  }
 0x895   : > { %v1938_v17 = vsub.f32 %v1919_v63, %v1934_v9  ;;  %1947 = vadd.xlane.f32.xlu1 %v1941_v16  ;;  %v3469_v9 = vld [vmem:[%s4214_s0 + $0x78] sm:$0xff]  }
 0x896   : > { %v3470_v16 = vld [vmem:[%s4214_s0 + $0x38] sm:$0xff]  }
 0x897   : > { %v1942_v18 = vmul.f32 %v1938_v17, %v1938_v17 }
 0x899   : > { %1949 = vadd.xlane.f32.xlu0 %v1942_v18 }
 0x91e   : > { %v1944_v33 = vpop.xlane.xlu1 %1943 }
 0x91f   : > { %v1951_v34 = vmul.f32 0.0078125, %v1944_v33 }
 0x920   : > { %v1946_v35 = vpop.xlane.xlu0 %1945 }
 0x921   : > { %v1955_v36 = vadd.f32 1e-05, %v1951_v34  ;;  %v1952_v37 = vmul.f32 0.0078125, %v1946_v35 }
 0x922   : > { %v1948_v38 = vpop.xlane.xlu1 %1947 }
 0x923   : > { %3503 = vrsqrt.f32 %v1955_v36  ;;  %v1956_v39 = vadd.f32 1e-05, %v1952_v37  ;;  %v1953_v40 = vmul.f32 0.0078125, %v1948_v38 }
 0x925   : > { %3505 = vrsqrt.f32 %v1956_v39  ;;  %v1957_v41 = vadd.f32 1e-05, %v1953_v40 }
 0x926   : > { %v1950_v42 = vpop.xlane.xlu0 %1949 }
 0x927   : > { %3507 = vrsqrt.f32 %v1957_v41  ;;  %v1954_v43 = vmul.f32 0.0078125, %v1950_v42 }
 0x929   : > { %v1958_v44 = vadd.f32 1e-05, %v1954_v43 }
 0x92b   : > { %3509 = vrsqrt.f32 %v1958_v44 }
 0x92d   : > { %v3504_v45 = vpop.eup %3503 }
 0x92e   : > { %v1963_v47 = vmul.f32 %v3504_v45, %v1935_v60  ;;  %v3460_v60 = vld [vmem:[%s4214_s0 + $0x10] sm:$0xff]  }
 0x92f   : > { %v3506_v48 = vpop.eup %3505 }
 0x930   : > { %v1964_v2 = vmul.f32 %v3506_v48, %v1936_v6  ;;  %v1973_v49 = vmul.f32 %v3006_v46, %v1963_v47  ;;  %v3463_v6 = vld [vmem:[%s4214_s0 + $0x60] sm:$0xff]  }
 0x931   : > { %v3508_v50 = vpop.eup %3507 }
 0x932   : > { %v1974_v53 = vmul.f32 %v3006_v46, %v1964_v2  ;;  %v4457_v54 = vadd.f32 %v3007_v51, %v1973_v49  ;;  %v1965_v56 = vmul.f32 %v3508_v50, %v1937_v13  ;;  %v3466_v13 = vld [vmem:[%s4214_s0 + $0x28] sm:$0xff]  }
 0x934   : > { %v4459_v55 = vadd.f32 %v3007_v51, %v1974_v53  ;;  %v1975_v62 = vmul.f32 %v3006_v46, %v1965_v56 }
 0x935   : > { %v3510_v57 = vpop.eup %3509 }
 0x936   : > { %v1987_v59 = vpack.c.bf16 %v4459_v55, %v4457_v54  ;;  %v1966_v61 = vmul.f32 %v3510_v57, %v1938_v17  ;;  %v4466_v3 = vadd.f32 %v3007_v51, %v1975_v62  ;;  %v2005_v17 = vld [vmem:[%s4261_s28] sm:$0x3] }
 0x937   : > { %v2010_v18 = vrot.slane %v2005_v17, %v4335_v20  ;;  %v2014_v19 = vrot.slane %v2005_v17, %v4338_v22 }
 0x938   : > { %2130 = vmatmul.mubr.bf16.vlgmr.msra.gmra.mrb[28].mxu0 %v1987_v59  ;;  %v1976_v63 = vmul.f32 %v3006_v46, %v1966_v61 }
 0x939   : > { %2139 = vmatprep.mubr.bf16.mxu0 %v3819_v52  ;;  %v3459_v52 = vld [vmem:[%s4214_s0 + $0x50] sm:$0xff]  }
 0x93a   : > { %v4464_v0 = vadd.f32 %v3007_v51, %v1976_v63  ;;  %3109 = vmatprep.subr.bf16.mxu1 %v3459_v52 }
 0x93b   : > { %3110 = vmatpush3.bf16.msra.mxu1 %v3460_v60 }
 0x93c   : > { %v1988_v4 = vpack.c.bf16 %v4464_v0, %v4466_v3  ;;  %3111 = vmatprep.subr.bf16.mxu1 %v3461_v10 }
 0x93f   : > { %3112 = vmatpush3.bf16.msra.mxu1 %v3462_v11 }
 0x940   : > { %2140 = vmatmul.mubr.bf16.gmra.mrb[32].mxu0 %v1988_v4  ;;  %3113 = vmatprep.subr.bf16.mxu1 %v3463_v6 }
 0x943   : > { %3114 = vmatpush3.bf16.msra.mxu1 %v3464_v12 }
 0x944   : > { %3115 = vmatprep.subr.bf16.mxu1 %v3465_v7 }
 0x947   : > { %3116 = vmatpush3.bf16.msra.mxu1 %v3466_v13 }
 0x948   : > { %3117 = vmatprep.subr.bf16.mxu1 %v3467_v14 }
 0x94b   : > { %3118 = vmatpush3.bf16.msra.mxu1 %v3468_v15 }
 0x94c   : > { %3119 = vmatprep.subr.bf16.mxu1 %v3469_v9 }
 0x94f   : > { %3120 = vmatpush3.bf16.msra.mxu1 %v3470_v16 }
 0xa0b   : > { %v2131_v21 = vpop.f32.mrb[28].mxu0 }
 0xa0c   : > { %v4489_v23 = vadd.f32 %v2131_v21, %v2010_v18  ;;  %v2133_v24 = vpop.f32.mrb[29].mxu0 }
 0xa0d   : > { %v4491_v25 = vadd.f32 %v2133_v24, %v2014_v19  ;;  %v2135_v26 = vpop.f32.mrb[30].mxu0 }
 0xa0e   : > { %v2158_v27 = vmul.f32 0.044715, %v4489_v23  ;;  %v4494_v28 = vadd.f32 %v2135_v26, %v2010_v18  ;;  %v2137_v29 = vpop.f32.mrb[31].mxu0  ;;  %v2150_v26 = vmul.f32 0.5, %v4489_v23 }
 0xa0f   : > { %v2159_v30 = vmul.f32 0.044715, %v4491_v25  ;;  %v4497_v31 = vadd.f32 %v2137_v29, %v2014_v19 }
 0xa10   : > { %v2166_v20 = vmul.f32 %v2158_v27, %v4489_v23  ;;  %v2160_v22 = vmul.f32 0.044715, %v4494_v28  ;;  %v2152_v27 = vmul.f32 0.5, %v4494_v28 }
 0xa11   : > { %v2167_v32 = vmul.f32 %v2159_v30, %v4491_v25  ;;  %v2161_v33 = vmul.f32 0.044715, %v4497_v31  ;;  %v2151_v30 = vmul.f32 0.5, %v4491_v25 }
 0xa12   : > { %v2174_v34 = vmul.f32 %v2166_v20, %v4489_v23  ;;  %v2168_v35 = vmul.f32 %v2160_v22, %v4494_v28  ;;  %v2153_v20 = vmul.f32 0.5, %v4497_v31 }
 0xa13   : > { %v2175_v36 = vmul.f32 %v2167_v32, %v4491_v25  ;;  %v2169_v37 = vmul.f32 %v2161_v33, %v4497_v31  ;;  %v2141_v38 = vpop.f32.mrb[32].mxu0 }
 0xa14   : > { %v2182_v39 = vadd.f32 %v2174_v34, %v4489_v23  ;;  %v2176_v40 = vmul.f32 %v2168_v35, %v4494_v28  ;;  %v4509_v41 = vadd.f32 %v2141_v38, %v2010_v18  ;;  %v2143_v42 = vpop.f32.mrb[33].mxu0 }
 0xa15   : > { %v2177_v43 = vmul.f32 %v2169_v37, %v4497_v31  ;;  %v4512_v44 = vadd.f32 %v2143_v42, %v2014_v19  ;;  %v2145_v45 = vpop.f32.mrb[34].mxu0  ;;  %v2183_v46 = vadd.f32 %v2175_v36, %v4491_v25 }
 0xa16   : > { %v2190_v47 = vmul.f32 0.7978846, %v2182_v39  ;;  %v2184_v48 = vadd.f32 %v2176_v40, %v4494_v28  ;;  %v2162_v2 = vmul.f32 0.044715, %v4509_v41  ;;  %v2146_v49 = vadd.f32 %v2145_v45, %v2010_v18  ;;  %v2147_v50 = vpop.f32.mrb[35].mxu0 }
 0xa17   : > { %v2163_v51 = vmul.f32 0.044715, %v4512_v44  ;;  %v2148_v53 = vadd.f32 %v2147_v50, %v2014_v19  ;;  %v2185_v56 = vadd.f32 %v2177_v43, %v4497_v31  ;;  %v2191_v57 = vmul.f32 0.7978846, %v2183_v46 }
 0xa18   : > { %3511 = vtanh.f32 %v2190_v47  ;;  %v2192_v59 = vmul.f32 0.7978846, %v2184_v48  ;;  %v2170_v61 = vmul.f32 %v2162_v2, %v4509_v41  ;;  %v2164_v62 = vmul.f32 0.044715, %v2146_v49 }
 0xa19   : > { %v2171_v63 = vmul.f32 %v2163_v51, %v4512_v44  ;;  %v2165_v4 = vmul.f32 0.044715, %v2148_v53  ;;  %v2193_v1 = vmul.f32 0.7978846, %v2185_v56  ;;  %3513 = vtanh.f32 %v2191_v57 }
 0xa1a   : > { %3515 = vtanh.f32 %v2192_v59  ;;  %v2178_v58 = vmul.f32 %v2170_v61, %v4509_v41  ;;  %v2172_v5 = vmul.f32 %v2164_v62, %v2146_v49  ;;  %v2154_v25 = vmul.f32 0.5, %v4509_v41 }
 0xa1b   : > { %v2179_v8 = vmul.f32 %v2171_v63, %v4512_v44  ;;  %v2173_v52 = vmul.f32 %v2165_v4, %v2148_v53  ;;  %3517 = vtanh.f32 %v2193_v1  ;;  %v2156_v28 = vmul.f32 0.5, %v2146_v49 }
 0xa1c   : > { %v2180_v60 = vmul.f32 %v2172_v5, %v2146_v49  ;;  %v2186_v10 = vadd.f32 %v2178_v58, %v4509_v41  ;;  %v2155_v45 = vmul.f32 0.5, %v4512_v44  ;;  %v2157_v46 = vmul.f32 0.5, %v2148_v53  ;;  %v3024_v41 = vld [vmem:[%s896_s4] ss:$0 sm:$0xff] }
 0xa1d   : > { %v2181_v11 = vmul.f32 %v2173_v52, %v2148_v53  ;;  %v2187_v6 = vadd.f32 %v2179_v8, %v4512_v44 }
 0xa1e   : > { %v2188_v12 = vadd.f32 %v2180_v60, %v2146_v49  ;;  %v2194_v7 = vmul.f32 0.7978846, %v2186_v10 }
 0xa1f   : > { %v2189_v13 = vadd.f32 %v2181_v11, %v2148_v53  ;;  %v2195_v14 = vmul.f32 0.7978846, %v2187_v6 }
 0xa20   : > { %v2196_v15 = vmul.f32 0.7978846, %v2188_v12  ;;  %3519 = vtanh.f32 %v2194_v7 }
 0xa21   : > { %v2197_v9 = vmul.f32 0.7978846, %v2189_v13  ;;  %3521 = vtanh.f32 %v2195_v14 }
 0xa22   : > { %v3512_v16 = vpop.eup %3511  ;;  %3523 = vtanh.f32 %v2196_v15 }
 0xa23   : > { %v3514_v17 = vpop.eup %3513  ;;  %v2206_v18 = vadd.f32 1.0, %v3512_v16  ;;  %3525 = vtanh.f32 %v2197_v9 }
 0xa24   : > { %v3516_v19 = vpop.eup %3515  ;;  %v2207_v21 = vadd.f32 1.0, %v3514_v17 }
 0xa25   : > { %v3518_v24 = vpop.eup %3517  ;;  %v2208_v29 = vadd.f32 1.0, %v3516_v19  ;;  %v2214_v32 = vmul.f32 %v2206_v18, %v2150_v26 }
 0xa26   : > { %v2209_v22 = vadd.f32 1.0, %v3518_v24  ;;  %v2215_v34 = vmul.f32 %v2207_v21, %v2151_v30 }
 0xa27   : > { %v2216_v33 = vmul.f32 %v2208_v29, %v2152_v27 }
 0xa28   : > { %v2217_v35 = vmul.f32 %v2209_v22, %v2153_v20 }
 0xa29   : > { %v2222_v36 = vpack.c.bf16 %v2216_v33, %v2214_v32 }
 0xa2a   : > { %v3520_v37 = vpop.eup %3519  ;;  %v2223_v38 = vpack.c.bf16 %v2217_v35, %v2215_v34 }
 0xa2b   : > { %v3522_v39 = vpop.eup %3521  ;;  %v2210_v40 = vadd.f32 1.0, %v3520_v37 }
 0xa2c   : > { %v3524_v42 = vpop.eup %3523  ;;  %2393 = vmatprep.mubr.bf16.mxu1 %v2223_v38  ;;  %v2211_v23 = vadd.f32 1.0, %v3522_v39 }
 0xa2d   : > { %v3526_v43 = vpop.eup %3525  ;;  %2394 = vmatmul.mubr.bf16.vlgmr.msra.gmra.mrb[20].mxu1 %v2222_v36  ;;  %v2212_v31 = vadd.f32 1.0, %v3524_v42  ;;  %v2218_v48 = vmul.f32 %v2210_v40, %v2154_v25 }
 0xa2e   : > { %v2213_v47 = vadd.f32 1.0, %v3526_v43  ;;  %v2219_v50 = vmul.f32 %v2211_v23, %v2155_v45  ;;  %v3041_v23 = vld [vmem:[%s899_s13] ss:$0 sm:$0xff]  ;;  %s4702_s13 = sld [smem:[#allocation40_spill]] (!%p3043_p13) }
 0xa2f   : > { %v2220_v2 = vmul.f32 %v2212_v31, %v2156_v28  ;;  %v3042_v28 = vld [vmem:[%s4701_s8] ss:$0 sm:$0xff] }
 0xa30   : > { %v2221_v51 = vmul.f32 %v2213_v47, %v2157_v46 }
 0xa31   : > { %v2224_v56 = vpack.c.bf16 %v2220_v2, %v2218_v48 }
 0xa32   : > { %v2225_v57 = vpack.c.bf16 %v2221_v51, %v2219_v50 }
 0xa34   : > { %2401 = vmatprep.mubr.bf16.mxu1 %v2225_v57 }
 0xa35   : > { %2402 = vmatmul.mubr.bf16.gmra.mrb[24].mxu1 %v2224_v56 }
 0xb00   : > { %v3121_v59 = vpop.f32.mrb[20].mxu1 }
 0xb01   : > { %v3122_v49 = vpop.f32.mrb[21].mxu1 }
 0xb02   : > { %v3123_v61 = vadd.f32 %v3122_v49, %v3121_v59  ;;  %v3124_v62 = vpop.f32.mrb[22].mxu1 }
 0xb03   : > { %v3125_v44 = vpop.f32.mrb[23].mxu1 }
 0xb04   : > { %v2396_v53 = vadd.f32 %v3123_v61, %v3024_v41  ;;  %v3126_v63 = vadd.f32 %v3125_v44, %v3124_v62  ;;  %v3535_v61 = vld [vmem:[#allocation11] sm:$0xff] (!%p3043_p13)   ;;  %v3823_v62 = vmov (!%p3043_p13), 0.0   ;;  %v3536_v44 = vld [vmem:[#allocation11 + $0x8] sm:$0xff] (!%p3043_p13)  }
 0xb05   : > { %3239 = vmatprep.subr.bf16.mxu0 (!%p3043_p13), %v3823_v62  ;;  %3259 = vmatprep.subr.bf16.mxu1 (!%p3043_p13), %v3823_v62 }
 0xb06   : > { %v2399_v4 = vadd.f32 %v3126_v63, %v3024_v41  ;;  %v2410_v1 = vadd.f32 %v2396_v53, %v4457_v54  ;;  %3240 = vmatpush3.bf16.msra.mxu0 (!%p3043_p13), %v3535_v61  ;;  %3255 = vmatprep.mubr.msk.bf16.mxu0 (!%p3043_p13), %vm3824_vm3, %v3823_v62  ;;  %v3537_v53 = vld [vmem:[#allocation11 + $0x10] sm:$0xff] (!%p3043_p13)   ;;  %v3543_v63 = vld [vmem:[#allocation12] sm:$0xff] (!%p3043_p13)  }
 0xb07   : > { %3241 = vmatprep.subr.bf16.mxu0 (!%p3043_p13), %v3823_v62  ;;  %3275 = vmatprep.mubr.msk.bf16.mxu1 (!%p3043_p13), %vm3824_vm3, %v3823_v62 }
 0xb08   : > { %v3127_v58 = vpop.f32.mrb[24].mxu1  ;;  %2416 = vadd.xlane.f32.xlu1 %v2410_v1  ;;  %v2411_v5 = vadd.f32 %v2399_v4, %v4459_v55  ;;  %v3538_v4 = vld [vmem:[#allocation11 + $0x18] sm:$0xff] (!%p3043_p13)   ;;  %3260 = vmatpush3.bf16.msra.mxu1 (!%p3043_p13), %v3543_v63 }
 0xb09   : > { %v3128_v8 = vpop.f32.mrb[25].mxu1  ;;  %3261 = vmatprep.subr.bf16.mxu1 (!%p3043_p13), %v3823_v62 }
 0xb0a   : > { %v3129_v52 = vadd.f32 %v3128_v8, %v3127_v58  ;;  %v3130_v60 = vpop.f32.mrb[26].mxu1  ;;  %2418 = vadd.xlane.f32.xlu0 %v2411_v5  ;;  %3242 = vmatpush3.bf16.msra.mxu0 (!%p3043_p13), %v3536_v44  ;;  %v3539_v58 = vld [vmem:[#allocation11 + $0x20] sm:$0xff] (!%p3043_p13)   ;;  %v3540_v8 = vld [vmem:[#allocation11 + $0x28] sm:$0xff] (!%p3043_p13)  }
 0xb0b   : > { %v3131_v10 = vpop.f32.mrb[27].mxu1  ;;  %3243 = vmatprep.subr.bf16.mxu0 (!%p3043_p13), %v3823_v62 }
 0xb0c   : > { %v2404_v11 = vadd.f32 %v3129_v52, %v3024_v41  ;;  %v3132_v6 = vadd.f32 %v3131_v10, %v3130_v60  ;;  %v3546_v52 = vld [vmem:[#allocation12 + $0x18] sm:$0xff] (!%p3043_p13)   ;;  %v3541_v60 = vld [vmem:[#allocation11 + $0x30] sm:$0xff] (!%p3043_p13)  }
 0xb0e   : > { %v2407_v12 = vadd.f32 %v3132_v6, %v3024_v41  ;;  %v2412_v7 = vadd.f32 %v2404_v11, %v4466_v3  ;;  %3244 = vmatpush3.bf16.msra.mxu0 (!%p3043_p13), %v3537_v53  ;;  %v3547_v11 = vld [vmem:[#allocation12 + $0x20] sm:$0xff] (!%p3043_p13)   ;;  %v3542_v6 = vld [vmem:[#allocation11 + $0x38] sm:$0xff] (!%p3043_p13)  }
 0xb0f   : > { %3245 = vmatprep.subr.bf16.mxu0 (!%p3043_p13), %v3823_v62 }
 0xb10   : > { %2420 = vadd.xlane.f32.xlu1 %v2412_v7  ;;  %v2413_v13 = vadd.f32 %v2407_v12, %v4464_v0 }
 0xb12   : > { %2422 = vadd.xlane.f32.xlu0 %v2413_v13  ;;  %3246 = vmatpush3.bf16.msra.mxu0 (!%p3043_p13), %v3538_v4 }
 0xb13   : > { %3247 = vmatprep.subr.bf16.mxu0 (!%p3043_p13), %v3823_v62 }
 0xb16   : > { %3248 = vmatpush3.bf16.msra.mxu0 (!%p3043_p13), %v3539_v58 }
 0xb17   : > { %3249 = vmatprep.subr.bf16.mxu0 (!%p3043_p13), %v3823_v62 }
 0xb1a   : > { %3250 = vmatpush3.bf16.msra.mxu0 (!%p3043_p13), %v3540_v8 }
 0xb1b   : > { %3251 = vmatprep.subr.bf16.mxu0 (!%p3043_p13), %v3823_v62 }
 0xb1e   : > { %3252 = vmatpush3.bf16.msra.mxu0 (!%p3043_p13), %v3541_v60 }
 0xb1f   : > { %3253 = vmatprep.subr.bf16.mxu0 (!%p3043_p13), %v3823_v62 }
 0xb22   : > { %3254 = vmatpush3.bf16.msra.mxu0 (!%p3043_p13), %v3542_v6 }
 0xb95   : > { %v2417_v14 = vpop.xlane.xlu1 %2416 }
 0xb96   : > { %v2424_v54 = vmul.f32 0.0078125, %v2417_v14  ;;  %v3549_v14 = vld [vmem:[#allocation12 + $0x30] sm:$0xff] (!%p3043_p13)  }
 0xb97   : > { %v2419_v15 = vpop.xlane.xlu0 %2418 }
 0xb98   : > { %v2428_v9 = vsub.f32 %v2410_v1, %v2424_v54  ;;  %v2425_v16 = vmul.f32 0.0078125, %v2419_v15  ;;  %v3544_v1 = vld [vmem:[#allocation12 + $0x8] sm:$0xff] (!%p3043_p13)   ;;  %v3550_v54 = vld [vmem:[#allocation12 + $0x38] sm:$0xff] (!%p3043_p13)  }
 0xb99   : > { %3262 = vmatpush3.bf16.msra.mxu1 (!%p3043_p13), %v3544_v1  ;;  %v3044_v15 = vld [vmem:[%s4702_s13] ss:$0 sm:$0xff] (!%p3043_p13) }
 0xb9a   : > { %v2429_v55 = vsub.f32 %v2411_v5, %v2425_v16  ;;  %v2432_v17 = vmul.f32 %v2428_v9, %v2428_v9  ;;  %v3545_v5 = vld [vmem:[#allocation12 + $0x10] sm:$0xff] (!%p3043_p13)   ;;  %3263 = vmatprep.subr.bf16.mxu1 (!%p3043_p13), %v3823_v62 }
 0xb9c   : > { %2436 = vadd.xlane.f32.xlu1 %v2432_v17  ;;  %v2433_v18 = vmul.f32 %v2429_v55, %v2429_v55 }
 0xb9d   : > { %v2421_v19 = vpop.xlane.xlu1 %2420  ;;  %3264 = vmatpush3.bf16.msra.mxu1 (!%p3043_p13), %v3545_v5 }
 0xb9e   : > { %v2426_v21 = vmul.f32 0.0078125, %v2421_v19  ;;  %2438 = vadd.xlane.f32.xlu0 %v2433_v18  ;;  %3265 = vmatprep.subr.bf16.mxu1 (!%p3043_p13), %v3823_v62 }
 0xb9f   : > { %v2423_v24 = vpop.xlane.xlu0 %2422 }
 0xba0   : > { %v2430_v26 = vsub.f32 %v2412_v7, %v2426_v21  ;;  %v2427_v27 = vmul.f32 0.0078125, %v2423_v24  ;;  %v3548_v7 = vld [vmem:[#allocation12 + $0x28] sm:$0xff] (!%p3043_p13)   ;;  %v3053_v24 = vld [vmem:[%s4703_s12] ss:$0 sm:$0xff] (!%p3043_p13) }
 0xba1   : > { %3266 = vmatpush3.bf16.msra.mxu1 (!%p3043_p13), %v3546_v52 }
 0xba2   : > { %v2431_v3 = vsub.f32 %v2413_v13, %v2427_v27  ;;  %v2434_v29 = vmul.f32 %v2430_v26, %v2430_v26  ;;  %3267 = vmatprep.subr.bf16.mxu1 (!%p3043_p13), %v3823_v62 }
 0xba4   : > { %2440 = vadd.xlane.f32.xlu1 %v2434_v29  ;;  %v2435_v0 = vmul.f32 %v2431_v3, %v2431_v3 }
 0xba5   : > { %3268 = vmatpush3.bf16.msra.mxu1 (!%p3043_p13), %v3547_v11 }
 0xba6   : > { %2442 = vadd.xlane.f32.xlu0 %v2435_v0  ;;  %3269 = vmatprep.subr.bf16.mxu1 (!%p3043_p13), %v3823_v62 }
 0xba9   : > { %3270 = vmatpush3.bf16.msra.mxu1 (!%p3043_p13), %v3548_v7 }
 0xbaa   : > { %3271 = vmatprep.subr.bf16.mxu1 (!%p3043_p13), %v3823_v62 }
 0xbad   : > { %3272 = vmatpush3.bf16.msra.mxu1 (!%p3043_p13), %v3549_v14 }
 0xbae   : > { %3273 = vmatprep.subr.bf16.mxu1 (!%p3043_p13), %v3823_v62 }
 0xbb1   : > { %3274 = vmatpush3.bf16.msra.mxu1 (!%p3043_p13), %v3550_v54 }
 0xc29   : > { %v2437_v30 = vpop.xlane.xlu1 %2436 }
 0xc2a   : > { %v2444_v20 = vmul.f32 0.0078125, %v2437_v30 }
 0xc2b   : > { %v2439_v22 = vpop.xlane.xlu0 %2438 }
 0xc2c   : > { %v2448_v32 = vadd.f32 1e-05, %v2444_v20  ;;  %v2445_v33 = vmul.f32 0.0078125, %v2439_v22 }
 0xc2e   : > { %3527 = vrsqrt.f32 %v2448_v32  ;;  %v2449_v34 = vadd.f32 1e-05, %v2445_v33 }
 0xc30   : > { %3529 = vrsqrt.f32 %v2449_v34 }
 0xc31   : > { %v2441_v35 = vpop.xlane.xlu1 %2440 }
 0xc32   : > { %v2446_v36 = vmul.f32 0.0078125, %v2441_v35 }
 0xc33   : > { %v2443_v37 = vpop.xlane.xlu0 %2442 }
 0xc34   : > { %v2450_v38 = vadd.f32 1e-05, %v2446_v36  ;;  %v2447_v39 = vmul.f32 0.0078125, %v2443_v37 }
 0xc36   : > { %3531 = vrsqrt.f32 %v2450_v38  ;;  %v2451_v40 = vadd.f32 1e-05, %v2447_v39 }
 0xc38   : > { %v3528_v42 = vpop.eup %3527  ;;  %3533 = vrsqrt.f32 %v2451_v40 }
 0xc39   : > { %v2456_v43 = vmul.f32 %v3528_v42, %v2428_v9 }
 0xc3a   : > { %v3530_v25 = vpop.eup %3529 }
 0xc3b   : > { %v2466_v31 = vmul.f32 %v3041_v23, %v2456_v43  ;;  %v2457_v45 = vmul.f32 %v3530_v25, %v2429_v55 }
 0xc3d   : > { %v2476_v46 = vadd.f32 %v3042_v28, %v2466_v31  ;;  %v2467_v47 = vmul.f32 %v3041_v23, %v2457_v45 }
 0xc3f   : > { %2480 = vst [vmem:[#allocation2] sm:$0xff] %v2476_v46  ;;  %v2477_v48 = vadd.f32 %v3042_v28, %v2467_v47 }
 0xc40   : > { %v3532_v2 = vpop.eup %3531 }
 0xc41   : > { %2481 = vst [vmem:[#allocation2 + $0x8] sm:$0xff] %v2477_v48  ;;  %v2458_v50 = vmul.f32 %v3532_v2, %v2430_v26 }
 0xc42   : > { %v3534_v51 = vpop.eup %3533 }
 0xc43   : > { %v2468_v56 = vmul.f32 %v3041_v23, %v2458_v50  ;;  %v2459_v57 = vmul.f32 %v3534_v51, %v2431_v3  ;;  %2487 = sbr.rel (%p3043_p13) target bundleno = 3581 (0xdfd), region = 132 }
 0xc45   : > { %v2478_v59 = vadd.f32 %v3042_v28, %v2468_v56  ;;  %v2469_v41 = vmul.f32 %v3041_v23, %v2459_v57 }
 0xc47   : > { %2482 = vst [vmem:[#allocation2 + $0x10] sm:$0xff] %v2478_v59  ;;  %v2479_v49 = vadd.f32 %v3042_v28, %v2469_v41  ;;  %v2489_v10 = vrot.slane (!%p3043_p13), %v2478_v59, 7 }
 0xc49   : > { %2483 = vst [vmem:[#allocation2 + $0x18] sm:$0xff] %v2479_v49  ;;  %v2492_v12 = vsel (!%p3043_p13), %vm2491_vm4, %v2476_v46, %v2489_v10 }
 0xc4a   : > { %v2493_v13 = vpack.c.bf16 %v2492_v12, %v2492_v12 }
 0xc4c   : > { %3256 = vmatmul.mubr.bf16.vlgmr.msra.gmra.mrb[0].mxu0 %v2493_v13 }
 0xd1f   : > { %v2599_v9 = vpop.f32.mrb[0].mxu0 }
 0xd20   : > { %v2600_v16 = vadd.f32 %v3044_v15, %v2599_v9  ;;  %v3257_v55 = vpop.f32.mrb[1].mxu0 }
 0xd21   : > { %v2602_v17 = vpop.f32.mrb[2].mxu0 }
 0xd22   : > { %v2605_v18 = vmax.f32 %v2600_v16, 0.0  ;;  %v3258_v19 = vpop.f32.mrb[3].mxu0 }
 0xd24   : > { %v2606_v21 = vpack.c.bf16 %v2605_v18, %v2605_v18 }
 0xd26   : > { %3276 = vmatmul.mubr.bf16.vlgmr.msra.gmra.mrb[0].mxu1 %v2606_v21 }
 0xdf9   : > { %v2712_v26 = vpop.f32.mrb[0].mxu1 }
 0xdfa   : > { %v2713_v27 = vadd.f32 %v3053_v24, %v2712_v26  ;;  %v3277_v3 = vpop.f32.mrb[1].mxu1 }
 0xdfb   : > { %v2715_v29 = vpop.f32.mrb[2].mxu1 }
 0xdfc   : > { %2718 = vst [vmem:[#allocation14] sm:$0x3] %v2713_v27  ;;  %v3278_v0 = vpop.f32.mrb[3].mxu1 }
 0xdfd PF: > { %p3326_p5 = scmp.eq.s32.totalorder %s3950_s2, 1  ;;  %s3825_s21 = smov [#allocation14]  }
 0xdfe   : > { %s2726_s6 = sshll.u32 %s3825_s21, 4  ;;  %s2727_s6 = int_to_ptr.vmem [resolvable:$true] %s2726_s6 }
 0xdff   : > { %s3727_s9 = scalar_lea.vmem %s2727_s6, 32  ;;  %p3734_p3 = scmp.lt.s32.totalorder %s2727_s6, %s2727_s6 }
 0xe00   : > { %p3728_p11 = scmp.ne.s32.totalorder %s2727_s6, %s3727_s9  ;;  %p3735_p1 = scmp.lt.s32.totalorder %s3727_s9, %s3727_s9 }
 0xe02   : > { %p3729_p10 = pnand %p3728_p11, %p3326_p5  ;;  %p3736_p9 = por %p3735_p1, %p3734_p3 }
 0xe04   : > { %p3730_p0 = pneg %p3729_p10 }
 0xe06   : > { %p3737_p2 = pnand %p3736_p9, %p3730_p0 }
 0xe08   : > { %3740 = shalt.err (!%p3737_p2)
}
 0xe09   : > { %s4704_s14 = sld [smem:[#allocation42_spill]] }
 0xe0f   : > { %s3741_s20 = scalar_lea.hbm %s4704_s14, 32 }
 0xe10   : > { %p3742_p8 = scmp.ne.s32.totalorder %s4704_s14, %s3741_s20  ;;  %p3747_p4 = scmp.lt.u32.totalorder %s3741_s20, %s4704_s14 }
 0xe12   : > { %p3743_p12 = pnand %p3742_p8, %p3326_p5 }
 0xe14   : > { %p3744_p6 = pneg %p3743_p12 }
 0xe16   : > { %p3749_p7 = pnand %p3747_p4, %p3744_p6 }
 0xe18   : > { %3752 = shalt.err (!%p3749_p7)
}
 0xe19   : > { %3298 = dma.vmem_to_hbm [thread:$0]  (%p3326_p5), %s2727_s6, 32, %s4704_s14, [#allocation5]  }
 0xe1a   : > { %3790 = dma.done.wait (%p3326_p5), [#allocation5], 32  }
 0xe1b   : > { %3792 = vsyncadd (%p3326_p5), [#allocation5], 4294967264 }
 0xe1c PF: > { %s4705_s24 = sld [smem:[#allocation22_spill]]  ;;  %s4706_s0 = sld [smem:[#allocation21_spill]] }
 0xe1d   : > { %s4707_s23 = sld [smem:[#allocation23_spill]]  ;;  %s4708_s1 = smov %s3799_s22 }
 0xe22   : > { %p38_p13 = scmp.ge.s32.totalorder %s4705_s24, 4   ;;  %s4709_s22 = smov %s4706_s0 }
 0xe24   :  { %40 = sbr.rel (!%p38_p13) target bundleno = 29 (0x1d), region = 214 }
 0xe2b   :  { %2739 = vsyncpa [#allocation4], 1 }
 0xe2c   :  { %2741 = vsyncpa [#allocation4 + $0x1], 1 }
 0xe2d   :  { %2742 = vsyncpa [#allocation7], 1 }
 0xe2e   :  { %2744 = vsyncpa [#allocation7 + $0x1], 1 }
 0xe2f   :  { %2745 = vsyncpa [#allocation10], 1 }
 0xe30   :  { %2747 = vsyncpa [#allocation10 + $0x1], 1 }
 0xe31   :  { %2748 = vsyncpa [#allocation13], 1 }
 0xe32   :  { %2749 = vsyncpa [#allocation5], 1 }
 0xe33   :  { %2751 = vsyncpa [#allocation5 + $0x1], 1 }

</bundles_post_ra>
